<compile_context>
chip_gen: v7x
topology: tpu7x:2x2x1
jax: 0.10.0
libtpu: 0.0.40
codegen_flags: <defaults>
</compile_context>

<pallas_src>
import functools

import jax
import jax.numpy as jnp
import numpy as np
from jax.experimental import pallas as pl
from jax.experimental.pallas import tpu as pltpu

HIDDEN = 500        # KAE hard-codes 500 hidden units / GP tasks
HIDDEN_PAD = 512    # lane-aligned padding (all pads are zeros -> same math)
GRID_SIZE = 128
GRID_BOUNDS = (-50.0, 50.0)


def _round_up(x, m):
    return (x + m - 1) // m * m


# ----------------------------------------------------------------------------
# Kernel: one batch tile of the full KAE forward.
# ----------------------------------------------------------------------------
def kae_kernel(
    x_ref,                       # (TN, n_input) f32
    we1_ref, be1_ref,            # (n_input, 512) bf16, (1, 512) f32
    coef_ref,                    # (4*n_cells, 512) f32 spline coefficients
    wg2_ref, bg2_ref,            # (512, 512) bf16, (1, 512) f32
    wg1_ref, bg1_ref,            # (512, n_input) bf16, (1, n_input) f32
    wd1_ref, bd1_ref,            # (n_input, 64) bf16, (1, 64) f32
    wd2_ref, bd2_ref,            # (64, 16) bf16, (1, 16) f32
    wd3_ref, bd3_ref,            # (16, 1) bf16, (1, 1) f32
    cT_ref, csq_ref,             # (512, K) bf16, (1, K) f32
    # outputs
    mu_ref, z_ref, zbar_ref, z1_ref, small_ref,
    *, n_cells, g0, inv_h, n_clusters,
):
    f32 = jnp.float32
    bf16 = jnp.bfloat16
    x = x_ref[...]
    tn = x.shape[0]

    def dense(v, w_ref, b_ref):
        # bf16 MXU matmul with f32 accumulation; bias add in f32.
        return jnp.dot(v.astype(bf16), w_ref[...],
                       preferred_element_type=f32) + b_ref[...]

    # ---- z1 = tanh(e1(x)) ----------------------------------------------------
    z1 = jnp.tanh(dense(x, we1_ref, be1_ref))               # (TN, 512)
    z1_ref[...] = z1

    # ---- GP predictive mean via precomputed piecewise-cubic spline ------------
    # Host folded the cubic-convolution interpolation of vmean into per-cell
    # Horner coefficients (rows 4*c .. 4*c+3 hold a3..a0 of cell c).
    s = (z1 - g0) * inv_h                                    # cell-units offset
    cell = jnp.clip(jnp.floor(s), 0.0, float(n_cells - 1))
    t = s - cell                                             # local coord in [0,1]

    def pick(j):
        rows = [coef_ref[pl.ds(4 * c + j, 1), :] for c in range(n_cells)]
        out = rows[-1]
        for c in range(n_cells - 2, -1, -1):
            out = jnp.where(cell < (c + 0.5), rows[c], out)
        return out

    a3, a2, a1, a0 = pick(0), pick(1), pick(2), pick(3)
    z = ((a3 * t + a2) * t + a1) * t + a0                    # (TN, 512) f32
    z_ref[...] = z

    # ---- zbar = tanh(g2(z)); mu = tanh(g1(zbar)) ------------------------------
    zbar = jnp.tanh(dense(z, wg2_ref, bg2_ref))
    zbar_ref[...] = zbar
    mu = jnp.tanh(dense(zbar, wg1_ref, bg1_ref))
    mu_ref[...] = mu

    # ---- discriminator: single fused pass over stacked [mu ; x] ---------------
    dstack = jnp.concatenate([mu, x], axis=0)                # (2*TN, n_input)
    hdd = jnp.tanh(dense(dstack, wd1_ref, bd1_ref))
    hdd = jnp.tanh(dense(hdd, wd2_ref, bd2_ref))
    dout = dense(hdd, wd3_ref, bd3_ref)                      # (2*TN, 1)
    fake = dout[:tn]
    real = dout[tn:]

    # ---- student-t soft assignments (MXU distance form, bf16 cross term) ------
    cT = cT_ref[...]                                         # (512, K) bf16
    csq = csq_ref[...]                                       # (1, K) f32

    def soft_assign(v):
        v2 = jnp.sum(v * v, axis=1, keepdims=True)           # (TN, 1) f32
        cross = jnp.dot(v.astype(bf16), cT, preferred_element_type=f32)
        dist = jnp.maximum(v2 + csq - 2.0 * cross, 0.0)
        sim = 1.0 / (1.0 + dist)
        # original applies sim ** ((1 + 1.0) / 2.0) -> exponent 1.0 (identity)
        return sim / jnp.sum(sim, axis=1, keepdims=True)

    p = soft_assign(z)
    q = soft_assign(zbar)

    # ---- pack narrow outputs into one lane-dense block: [p | q | fake | real] -
    small_ref[...] = jnp.zeros_like(small_ref)
    small_ref[:, pl.ds(0, n_clusters)] = p
    small_ref[:, pl.ds(n_clusters, n_clusters)] = q
    small_ref[:, pl.ds(2 * n_clusters, 1)] = fake
    small_ref[:, pl.ds(2 * n_clusters + 1, 1)] = real


# ----------------------------------------------------------------------------
# Parameter construction (f32 "PyTorch-like" params).
# ----------------------------------------------------------------------------
def init_params(key, n_input, n_clusters):
    ks = jax.random.split(key, 8)

    def linear(k, n_in, n_out):
        kw, kb = jax.random.split(k)
        bound = 1.0 / np.sqrt(n_in)
        w = jax.random.uniform(kw, (n_in, n_out), jnp.float32, -bound, bound)
        b = jax.random.uniform(kb, (1, n_out), jnp.float32, -bound, bound)
        return w, b

    p = {}
    p["e1"] = linear(ks[0], n_input, HIDDEN)
    p["g2"] = linear(ks[1], HIDDEN, HIDDEN)
    p["g1"] = linear(ks[2], HIDDEN, n_input)
    p["d1"] = linear(ks[3], n_input, 64)
    p["d2"] = linear(ks[4], 64, 16)
    p["d3"] = linear(ks[5], 16, 1)
    # cluster_layer: xavier_normal_ over (n_clusters, 500)
    xav_std = np.sqrt(2.0 / (n_clusters + HIDDEN))
    p["cluster"] = xav_std * jax.random.normal(ks[6], (n_clusters, HIDDEN), jnp.float32)
    # GP inducing grid (gpytorch extends bounds by one cell on each side).
    grid_diff = (GRID_BOUNDS[1] - GRID_BOUNDS[0]) / (GRID_SIZE - 2)
    p["grid_np"] = np.linspace(GRID_BOUNDS[0] - grid_diff, GRID_BOUNDS[1] + grid_diff,
                               GRID_SIZE, dtype=np.float32)
    # Variational mean per task (gpytorch init: 0 + 1e-3 * randn).
    p["vmean"] = 1e-3 * jax.random.normal(ks[7], (HIDDEN, GRID_SIZE), jnp.float32)
    return p


# ----------------------------------------------------------------------------
# Wrapper: batch-tiled pallas_call.
# ----------------------------------------------------------------------------
def kae_forward(x, params):
    N, n_input = x.shape
    n_clusters = params["cluster"].shape[0]
    f32, bf16 = jnp.float32, jnp.bfloat16

    # ---- static batch tiling --------------------------------------------------
    n_r8 = _round_up(N, 8)
    tile_n = min(512, n_r8)
    # v7x has two TensorCores: once the batch is big enough, ensure the
    # "parallel" grid axis has >= 2 steps so both cores get work.
    if n_r8 == tile_n and n_r8 >= 64:
        tile_n = _round_up(n_r8 // 2, 8)
    n_pad = _round_up(N, tile_n)
    if n_pad != N:
        x = jnp.pad(x, ((0, n_pad - N), (0, 0)))
    n_tiles = n_pad // tile_n

    # ---- fold the SKI cubic interpolation into per-cell spline coefficients ----
    grid = params["grid_np"]
    h = float(grid[1] - grid[0])
    assert h > 0.0 and np.allclose(np.diff(grid), h), "GP grid must be uniform"
    # cells covering tanh's range [-1, 1]
    k_lo = int(np.searchsorted(grid, -1.0, side="right")) - 1
    k_hi = int(np.searchsorted(grid, 1.0, side="right")) - 1
    n_cells = k_hi - k_lo + 1
    # the cubic-convolution stencil needs grid points k-1 .. k+2 for every cell
    assert k_lo >= 1 and k_hi + 2 <= GRID_SIZE - 1, "tanh range not interior to GP grid"
    assert grid[k_lo] <= -1.0 < grid[k_lo + 1] and grid[k_hi] <= 1.0 < grid[k_hi + 1]

    vm = params["vmean"]                                     # (500, 128) f32
    coef = jnp.zeros((4 * n_cells, HIDDEN_PAD), f32)
    for c in range(n_cells):
        k = k_lo + c
        m_m1, m_0, m_1, m_2 = vm[:, k - 1], vm[:, k], vm[:, k + 1], vm[:, k + 2]
        a3 = -0.5 * m_m1 + 1.5 * m_0 - 1.5 * m_1 + 0.5 * m_2
        a2 = m_m1 - 2.5 * m_0 + 2.0 * m_1 - 0.5 * m_2
        a1 = 0.5 * (m_1 - m_m1)
        a0 = m_0
        for j, a in enumerate((a3, a2, a1, a0)):
            coef = coef.at[4 * c + j, :HIDDEN].set(a)

    # ---- parameter prep: pad HIDDEN 500 -> 512, bf16 matmul weights ------------
    hp = HIDDEN_PAD - HIDDEN

    def padw(w, rows, cols):
        return jnp.pad(w, ((0, rows), (0, cols)))

    we1 = padw(params["e1"][0], 0, hp).astype(bf16)
    be1 = padw(params["e1"][1], 0, hp)
    wg2 = padw(params["g2"][0], hp, hp).astype(bf16)
    bg2 = padw(params["g2"][1], 0, hp)
    wg1 = padw(params["g1"][0], hp, 0).astype(bf16)
    bg1 = params["g1"][1]
    wd1 = params["d1"][0].astype(bf16); bd1 = params["d1"][1]
    wd2 = params["d2"][0].astype(bf16); bd2 = params["d2"][1]
    wd3 = params["d3"][0].astype(bf16); bd3 = params["d3"][1]
    cl_pad = padw(params["cluster"], 0, hp)                  # (K, 512) f32
    cT = cl_pad.T.astype(bf16)                               # (512, K) bf16
    csq = jnp.sum(cl_pad * cl_pad, axis=1, keepdims=True).T  # (1, K) f32

    weight_inputs = (we1, be1, coef, wg2, bg2, wg1, bg1,
                     wd1, bd1, wd2, bd2, wd3, bd3, cT, csq)

    small_w = _round_up(2 * n_clusters + 2, 128)             # packed p|q|fake|real

    def row_spec(width):
        return pl.BlockSpec((tile_n, width), lambda i: (i, 0))

    def full_spec(arr):
        return pl.BlockSpec(arr.shape, lambda i: (0, 0))

    in_specs = [row_spec(n_input)] + [full_spec(a) for a in weight_inputs]

    out_shapes = (
        jax.ShapeDtypeStruct((n_pad, n_input), f32),      # mu
        jax.ShapeDtypeStruct((n_pad, HIDDEN_PAD), f32),   # z
        jax.ShapeDtypeStruct((n_pad, HIDDEN_PAD), f32),   # zbar
        jax.ShapeDtypeStruct((n_pad, HIDDEN_PAD), f32),   # z1
        jax.ShapeDtypeStruct((n_pad, small_w), f32),      # packed [p|q|fake|real]
    )
    out_specs = (
        row_spec(n_input), row_spec(HIDDEN_PAD), row_spec(HIDDEN_PAD),
        row_spec(HIDDEN_PAD), row_spec(small_w),
    )

    outs = pl.pallas_call(
        functools.partial(kae_kernel, n_cells=n_cells, g0=float(grid[k_lo]),
                          inv_h=1.0 / h, n_clusters=n_clusters),
        out_shape=out_shapes,
        grid=(n_tiles,),
        in_specs=in_specs,
        out_specs=out_specs,
        compiler_params=pltpu.CompilerParams(
            dimension_semantics=("parallel",),
            vmem_limit_bytes=32 << 20,
        ),
    )(x, *weight_inputs)

    mu, z, zbar, z1, small = outs
    K = n_clusters
    p = small[:N, 0:K]
    q = small[:N, K:2 * K]
    fake = small[:N, 2 * K:2 * K + 1]
    real = small[:N, 2 * K + 1:2 * K + 2]
    # trim batch padding and the 500 -> 512 hidden padding
    return (mu[:N], z[:N, :HIDDEN], p, q, real, fake,
            zbar[:N, :HIDDEN], z1[:N, :HIDDEN])


# ----------------------------------------------------------------------------
# Pure-JAX reference (dense 128-point interpolation, f32 everywhere).
# ----------------------------------------------------------------------------
def kae_reference(x, params):
    def lin(p, v):
        return v @ p[0] + p[1]

    z1 = jnp.tanh(lin(params["e1"], x))
    grid = jnp.asarray(params["grid_np"])
    h = float(params["grid_np"][1] - params["grid_np"][0])
    u = jnp.abs(z1[:, :, None] - grid[None, None, :]) / h
    w_near = (1.5 * u - 2.5) * u * u + 1.0
    w_far = ((-0.5 * u + 2.5) * u - 4.0) * u + 2.0
    w = jnp.where(u < 1.0, w_near, jnp.where(u < 2.0, w_far, 0.0))
    z = jnp.sum(w * params["vmean"][None, :, :], axis=-1)
    zbar = jnp.tanh(lin(params["g2"], z))
    mu = jnp.tanh(lin(params["g1"], zbar))

    def disc(v):
        v = jnp.tanh(lin(params["d1"], v))
        v = jnp.tanh(lin(params["d2"], v))
        return lin(params["d3"], v)

    fake, real = disc(mu), disc(x)
    c = params["cluster"]

    def soft(v):
        s = 1.0 / (1.0 + jnp.sum((v[:, None, :] - c[None, :, :]) ** 2, axis=-1))
        return s / jnp.sum(s, axis=1, keepdims=True)

    return mu, z, soft(z), soft(zbar), real, fake, zbar, z1


if __name__ == "__main__":
    # Small, module-consistent shapes: batch = data_num = 8, n_input = 32,
    # n_clusters = 4, hidden = 500 (hard-coded by KAE), GP grid = 128.
    N, N_INPUT, N_CLUSTERS = 8, 32, 4

    key = jax.random.PRNGKey(0)
    kx, kp = jax.random.split(key)
    x = jax.random.normal(kx, (N, N_INPUT), jnp.float32)
    params = init_params(kp, N_INPUT, N_CLUSTERS)

    outs = jax.block_until_ready(kae_forward(x, params))
    mu, z, p, q, real, fake, zbar, z1 = outs

    assert mu.shape == (N, N_INPUT)
    assert z.shape == (N, HIDDEN) and zbar.shape == (N, HIDDEN) and z1.shape == (N, HIDDEN)
    assert p.shape == (N, N_CLUSTERS) and q.shape == (N, N_CLUSTERS)
    assert real.shape == (N, 1) and fake.shape == (N, 1)
    assert bool(jnp.all(jnp.isfinite(p))) and bool(jnp.all(jnp.isfinite(q)))
    assert bool(jnp.allclose(jnp.sum(p, axis=1), 1.0, atol=1e-5))
    assert bool(jnp.allclose(jnp.sum(q, axis=1), 1.0, atol=1e-5))

    # Per-output scaled tolerances (bf16 MXU weights vs the f32 reference).
    refs = kae_reference(x, params)
    names = ("mu", "z", "p", "q", "real", "fake", "zbar", "z1")
    for name, got, want in zip(names, outs, refs):
        got_np = np.asarray(got)
        want_np = np.asarray(want)
        err = float(np.max(np.abs(got_np - want_np)))
        scale = float(np.max(np.abs(want_np)))
        tol = 1e-4 + 5e-2 * scale
        assert err <= tol, f"{name}: err={err:.3e} tol={tol:.3e} scale={scale:.3e}"

    print("KERNEL_OK")
</pallas_src>

<mosaic_0001>
module attributes {stable_mosaic.version = 11 : i64} {
  func.func @kae_kernel(%arg0: i32, %arg1: memref<8x32xf32, #tpu.memory_space<vmem>>, %arg2: memref<32x512xbf16, #tpu.memory_space<vmem>>, %arg3: memref<1x512xf32, #tpu.memory_space<vmem>>, %arg4: memref<12x512xf32, #tpu.memory_space<vmem>>, %arg5: memref<512x512xbf16, #tpu.memory_space<vmem>>, %arg6: memref<1x512xf32, #tpu.memory_space<vmem>>, %arg7: memref<512x32xbf16, #tpu.memory_space<vmem>>, %arg8: memref<1x32xf32, #tpu.memory_space<vmem>>, %arg9: memref<32x64xbf16, #tpu.memory_space<vmem>>, %arg10: memref<1x64xf32, #tpu.memory_space<vmem>>, %arg11: memref<64x16xbf16, #tpu.memory_space<vmem>>, %arg12: memref<1x16xf32, #tpu.memory_space<vmem>>, %arg13: memref<16x1xbf16, #tpu.memory_space<vmem>>, %arg14: memref<1x1xf32, #tpu.memory_space<vmem>>, %arg15: memref<512x4xbf16, #tpu.memory_space<vmem>>, %arg16: memref<1x4xf32, #tpu.memory_space<vmem>>, %arg17: memref<8x32xf32, #tpu.memory_space<vmem>>, %arg18: memref<8x512xf32, #tpu.memory_space<vmem>>, %arg19: memref<8x512xf32, #tpu.memory_space<vmem>>, %arg20: memref<8x512xf32, #tpu.memory_space<vmem>>, %arg21: memref<8x128xf32, #tpu.memory_space<vmem>>) attributes {dimension_semantics = [#tpu.dimension_semantics<parallel>], iteration_bounds = array<i64: 1>, scalar_prefetch = 0 : i64, scratch_operands = 0 : i64, tpu.core_type = #tpu.core_type<tc>, window_params = [{transform_indices = @transform_0, window_bounds = array<i64: 8, 32>}, {pipeline_mode = #tpu.pipeline_mode<synchronous>, transform_indices = @transform_1, window_bounds = array<i64: 32, 512>}, {pipeline_mode = #tpu.pipeline_mode<synchronous>, transform_indices = @transform_2, window_bounds = array<i64: 1, 512>}, {pipeline_mode = #tpu.pipeline_mode<synchronous>, transform_indices = @transform_3, window_bounds = array<i64: 12, 512>}, {pipeline_mode = #tpu.pipeline_mode<synchronous>, transform_indices = @transform_4, window_bounds = array<i64: 512, 512>}, {pipeline_mode = #tpu.pipeline_mode<synchronous>, transform_indices = @transform_5, window_bounds = array<i64: 1, 512>}, {pipeline_mode = #tpu.pipeline_mode<synchronous>, transform_indices = @transform_6, window_bounds = array<i64: 512, 32>}, {pipeline_mode = #tpu.pipeline_mode<synchronous>, transform_indices = @transform_7, window_bounds = array<i64: 1, 32>}, {pipeline_mode = #tpu.pipeline_mode<synchronous>, transform_indices = @transform_8, window_bounds = array<i64: 32, 64>}, {pipeline_mode = #tpu.pipeline_mode<synchronous>, transform_indices = @transform_9, window_bounds = array<i64: 1, 64>}, {pipeline_mode = #tpu.pipeline_mode<synchronous>, transform_indices = @transform_10, window_bounds = array<i64: 64, 16>}, {pipeline_mode = #tpu.pipeline_mode<synchronous>, transform_indices = @transform_11, window_bounds = array<i64: 1, 16>}, {pipeline_mode = #tpu.pipeline_mode<synchronous>, transform_indices = @transform_12, window_bounds = array<i64: 16, 1>}, {pipeline_mode = #tpu.pipeline_mode<synchronous>, transform_indices = @transform_13, window_bounds = array<i64: 1, 1>}, {pipeline_mode = #tpu.pipeline_mode<synchronous>, transform_indices = @transform_14, window_bounds = array<i64: 512, 4>}, {pipeline_mode = #tpu.pipeline_mode<synchronous>, transform_indices = @transform_15, window_bounds = array<i64: 1, 4>}, {transform_indices = @transform_16, window_bounds = array<i64: 8, 32>}, {transform_indices = @transform_17, window_bounds = array<i64: 8, 512>}, {transform_indices = @transform_18, window_bounds = array<i64: 8, 512>}, {transform_indices = @transform_19, window_bounds = array<i64: 8, 512>}, {transform_indices = @transform_20, window_bounds = array<i64: 8, 128>}]} {
    %c0 = arith.constant 0 : index
    %c0_0 = arith.constant 0 : index
    %0 = vector.load %arg1[%c0, %c0_0] : memref<8x32xf32, #tpu.memory_space<vmem>>, vector<8x32xf32>
    %1 = arith.truncf %0 : vector<8x32xf32> to vector<8x32xbf16>
    %c0_1 = arith.constant 0 : index
    %c0_2 = arith.constant 0 : index
    %2 = vector.load %arg2[%c0_1, %c0_2] : memref<32x512xbf16, #tpu.memory_space<vmem>>, vector<32x512xbf16>
    %cst = arith.constant dense<0.000000e+00> : vector<8x512xf32>
    %3 = tpu.matmul %1, %2, %cst {dimension_numbers = #tpu.dot_dimension_numbers<[1], [0], [0], [1], [0, 0, 1, 1], [], []>} : vector<8x32xbf16>, vector<32x512xbf16>, vector<8x512xf32> -> vector<8x512xf32>
    %c0_3 = arith.constant 0 : index
    %c0_4 = arith.constant 0 : index
    %4 = vector.load %arg3[%c0_3, %c0_4] : memref<1x512xf32, #tpu.memory_space<vmem>>, vector<1x512xf32>
    %5 = vector.broadcast %4 : vector<1x512xf32> to vector<8x512xf32>
    %6 = arith.addf %3, %5 : vector<8x512xf32>
    %7 = math.tanh %6 : vector<8x512xf32>
    %c0_5 = arith.constant 0 : index
    %c0_6 = arith.constant 0 : index
    %8 = vector.load %arg20[%c0_5, %c0_6] : memref<8x512xf32, #tpu.memory_space<vmem>>, vector<8x512xf32>
    tpu.vector_store %arg20[%c0_5, %c0_6], %7 {strides = array<i32>} : memref<8x512xf32, #tpu.memory_space<vmem>>, vector<8x512xf32>,
    %cst_7 = arith.constant -1.199850e+00 : f32
    %9 = vector.broadcast %cst_7 : f32 to vector<8x512xf32>
    %10 = arith.subf %7, %9 : vector<8x512xf32>
    %cst_8 = arith.constant 1.25015616 : f32
    %11 = vector.broadcast %cst_8 : f32 to vector<8x512xf32>
    %12 = arith.mulf %10, %11 : vector<8x512xf32>
    %13 = math.floor %12 : vector<8x512xf32>
    %cst_9 = arith.constant 0.000000e+00 : f32
    %cst_10 = arith.constant 2.000000e+00 : f32
    %14 = vector.broadcast %cst_9 : f32 to vector<8x512xf32>
    %15 = arith.maximumf %14, %13 : vector<8x512xf32>
    %16 = vector.broadcast %cst_10 : f32 to vector<8x512xf32>
    %17 = arith.minimumf %16, %15 : vector<8x512xf32>
    %18 = arith.subf %12, %17 : vector<8x512xf32>
    %c0_11 = arith.constant 0 : index
    %c0_12 = arith.constant 0 : index
    %19 = vector.load %arg4[%c0_11, %c0_12] : memref<12x512xf32, #tpu.memory_space<vmem>>, vector<1x512xf32>
    %c4 = arith.constant 4 : index
    %c0_13 = arith.constant 0 : index
    %20 = vector.load %arg4[%c4, %c0_13] : memref<12x512xf32, #tpu.memory_space<vmem>>, vector<1x512xf32>
    %c8 = arith.constant 8 : index
    %c0_14 = arith.constant 0 : index
    %21 = vector.load %arg4[%c8, %c0_14] : memref<12x512xf32, #tpu.memory_space<vmem>>, vector<1x512xf32>
    %cst_15 = arith.constant 1.500000e+00 : f32
    %22 = vector.broadcast %cst_15 : f32 to vector<8x512xf32>
    %23 = arith.cmpf olt, %17, %22 : vector<8x512xf32>
    %24 = vector.shape_cast %20 : vector<1x512xf32> to vector<1x512xf32>
    %25 = vector.broadcast %24 : vector<1x512xf32> to vector<8x512xf32>
    %26 = vector.shape_cast %21 : vector<1x512xf32> to vector<1x512xf32>
    %27 = vector.broadcast %26 : vector<1x512xf32> to vector<8x512xf32>
    %28 = arith.select %23, %25, %27 : vector<8x512xi1>, vector<8x512xf32>
    %cst_16 = arith.constant 5.000000e-01 : f32
    %29 = vector.broadcast %cst_16 : f32 to vector<8x512xf32>
    %30 = arith.cmpf olt, %17, %29 : vector<8x512xf32>
    %31 = vector.shape_cast %19 : vector<1x512xf32> to vector<1x512xf32>
    %32 = vector.broadcast %31 : vector<1x512xf32> to vector<8x512xf32>
    %33 = arith.select %30, %32, %28 : vector<8x512xi1>, vector<8x512xf32>
    %c1 = arith.constant 1 : index
    %c0_17 = arith.constant 0 : index
    %34 = vector.load %arg4[%c1, %c0_17] : memref<12x512xf32, #tpu.memory_space<vmem>>, vector<1x512xf32>
    %c5 = arith.constant 5 : index
    %c0_18 = arith.constant 0 : index
    %35 = vector.load %arg4[%c5, %c0_18] : memref<12x512xf32, #tpu.memory_space<vmem>>, vector<1x512xf32>
    %c9 = arith.constant 9 : index
    %c0_19 = arith.constant 0 : index
    %36 = vector.load %arg4[%c9, %c0_19] : memref<12x512xf32, #tpu.memory_space<vmem>>, vector<1x512xf32>
    %cst_20 = arith.constant 1.500000e+00 : f32
    %37 = vector.broadcast %cst_20 : f32 to vector<8x512xf32>
    %38 = arith.cmpf olt, %17, %37 : vector<8x512xf32>
    %39 = vector.shape_cast %35 : vector<1x512xf32> to vector<1x512xf32>
    %40 = vector.broadcast %39 : vector<1x512xf32> to vector<8x512xf32>
    %41 = vector.shape_cast %36 : vector<1x512xf32> to vector<1x512xf32>
    %42 = vector.broadcast %41 : vector<1x512xf32> to vector<8x512xf32>
    %43 = arith.select %38, %40, %42 : vector<8x512xi1>, vector<8x512xf32>
    %cst_21 = arith.constant 5.000000e-01 : f32
    %44 = vector.broadcast %cst_21 : f32 to vector<8x512xf32>
    %45 = arith.cmpf olt, %17, %44 : vector<8x512xf32>
    %46 = vector.shape_cast %34 : vector<1x512xf32> to vector<1x512xf32>
    %47 = vector.broadcast %46 : vector<1x512xf32> to vector<8x512xf32>
    %48 = arith.select %45, %47, %43 : vector<8x512xi1>, vector<8x512xf32>
    %c2 = arith.constant 2 : index
    %c0_22 = arith.constant 0 : index
    %49 = vector.load %arg4[%c2, %c0_22] : memref<12x512xf32, #tpu.memory_space<vmem>>, vector<1x512xf32>
    %c6 = arith.constant 6 : index
    %c0_23 = arith.constant 0 : index
    %50 = vector.load %arg4[%c6, %c0_23] : memref<12x512xf32, #tpu.memory_space<vmem>>, vector<1x512xf32>
    %c10 = arith.constant 10 : index
    %c0_24 = arith.constant 0 : index
    %51 = vector.load %arg4[%c10, %c0_24] : memref<12x512xf32, #tpu.memory_space<vmem>>, vector<1x512xf32>
    %cst_25 = arith.constant 1.500000e+00 : f32
    %52 = vector.broadcast %cst_25 : f32 to vector<8x512xf32>
    %53 = arith.cmpf olt, %17, %52 : vector<8x512xf32>
    %54 = vector.shape_cast %50 : vector<1x512xf32> to vector<1x512xf32>
    %55 = vector.broadcast %54 : vector<1x512xf32> to vector<8x512xf32>
    %56 = vector.shape_cast %51 : vector<1x512xf32> to vector<1x512xf32>
    %57 = vector.broadcast %56 : vector<1x512xf32> to vector<8x512xf32>
    %58 = arith.select %53, %55, %57 : vector<8x512xi1>, vector<8x512xf32>
    %cst_26 = arith.constant 5.000000e-01 : f32
    %59 = vector.broadcast %cst_26 : f32 to vector<8x512xf32>
    %60 = arith.cmpf olt, %17, %59 : vector<8x512xf32>
    %61 = vector.shape_cast %49 : vector<1x512xf32> to vector<1x512xf32>
    %62 = vector.broadcast %61 : vector<1x512xf32> to vector<8x512xf32>
    %63 = arith.select %60, %62, %58 : vector<8x512xi1>, vector<8x512xf32>
    %c3 = arith.constant 3 : index
    %c0_27 = arith.constant 0 : index
    %64 = vector.load %arg4[%c3, %c0_27] : memref<12x512xf32, #tpu.memory_space<vmem>>, vector<1x512xf32>
    %c7 = arith.constant 7 : index
    %c0_28 = arith.constant 0 : index
    %65 = vector.load %arg4[%c7, %c0_28] : memref<12x512xf32, #tpu.memory_space<vmem>>, vector<1x512xf32>
    %c11 = arith.constant 11 : index
    %c0_29 = arith.constant 0 : index
    %66 = vector.load %arg4[%c11, %c0_29] : memref<12x512xf32, #tpu.memory_space<vmem>>, vector<1x512xf32>
    %cst_30 = arith.constant 1.500000e+00 : f32
    %67 = vector.broadcast %cst_30 : f32 to vector<8x512xf32>
    %68 = arith.cmpf olt, %17, %67 : vector<8x512xf32>
    %69 = vector.shape_cast %65 : vector<1x512xf32> to vector<1x512xf32>
    %70 = vector.broadcast %69 : vector<1x512xf32> to vector<8x512xf32>
    %71 = vector.shape_cast %66 : vector<1x512xf32> to vector<1x512xf32>
    %72 = vector.broadcast %71 : vector<1x512xf32> to vector<8x512xf32>
    %73 = arith.select %68, %70, %72 : vector<8x512xi1>, vector<8x512xf32>
    %cst_31 = arith.constant 5.000000e-01 : f32
    %74 = vector.broadcast %cst_31 : f32 to vector<8x512xf32>
    %75 = arith.cmpf olt, %17, %74 : vector<8x512xf32>
    %76 = vector.shape_cast %64 : vector<1x512xf32> to vector<1x512xf32>
    %77 = vector.broadcast %76 : vector<1x512xf32> to vector<8x512xf32>
    %78 = arith.select %75, %77, %73 : vector<8x512xi1>, vector<8x512xf32>
    %79 = arith.mulf %33, %18 : vector<8x512xf32>
    %80 = arith.addf %79, %48 : vector<8x512xf32>
    %81 = arith.mulf %80, %18 : vector<8x512xf32>
    %82 = arith.addf %81, %63 : vector<8x512xf32>
    %83 = arith.mulf %82, %18 : vector<8x512xf32>
    %84 = arith.addf %83, %78 : vector<8x512xf32>
    %c0_32 = arith.constant 0 : index
    %c0_33 = arith.constant 0 : index
    %85 = vector.load %arg18[%c0_32, %c0_33] : memref<8x512xf32, #tpu.memory_space<vmem>>, vector<8x512xf32>
    tpu.vector_store %arg18[%c0_32, %c0_33], %84 {strides = array<i32>} : memref<8x512xf32, #tpu.memory_space<vmem>>, vector<8x512xf32>,
    %86 = arith.truncf %84 : vector<8x512xf32> to vector<8x512xbf16>
    %c0_34 = arith.constant 0 : index
    %c0_35 = arith.constant 0 : index
    %87 = vector.load %arg5[%c0_34, %c0_35] : memref<512x512xbf16, #tpu.memory_space<vmem>>, vector<512x512xbf16>
    %cst_36 = arith.constant dense<0.000000e+00> : vector<8x512xf32>
    %88 = tpu.matmul %86, %87, %cst_36 {dimension_numbers = #tpu.dot_dimension_numbers<[1], [0], [0], [1], [0, 0, 1, 1], [], []>} : vector<8x512xbf16>, vector<512x512xbf16>, vector<8x512xf32> -> vector<8x512xf32>
    %c0_37 = arith.constant 0 : index
    %c0_38 = arith.constant 0 : index
    %89 = vector.load %arg6[%c0_37, %c0_38] : memref<1x512xf32, #tpu.memory_space<vmem>>, vector<1x512xf32>
    %90 = vector.broadcast %89 : vector<1x512xf32> to vector<8x512xf32>
    %91 = arith.addf %88, %90 : vector<8x512xf32>
    %92 = math.tanh %91 : vector<8x512xf32>
    %c0_39 = arith.constant 0 : index
    %c0_40 = arith.constant 0 : index
    %93 = vector.load %arg19[%c0_39, %c0_40] : memref<8x512xf32, #tpu.memory_space<vmem>>, vector<8x512xf32>
    tpu.vector_store %arg19[%c0_39, %c0_40], %92 {strides = array<i32>} : memref<8x512xf32, #tpu.memory_space<vmem>>, vector<8x512xf32>,
    %94 = arith.truncf %92 : vector<8x512xf32> to vector<8x512xbf16>
    %c0_41 = arith.constant 0 : index
    %c0_42 = arith.constant 0 : index
    %95 = vector.load %arg7[%c0_41, %c0_42] : memref<512x32xbf16, #tpu.memory_space<vmem>>, vector<512x32xbf16>
    %cst_43 = arith.constant dense<0.000000e+00> : vector<8x32xf32>
    %96 = tpu.matmul %94, %95, %cst_43 {dimension_numbers = #tpu.dot_dimension_numbers<[1], [0], [0], [1], [0, 0, 1, 1], [], []>} : vector<8x512xbf16>, vector<512x32xbf16>, vector<8x32xf32> -> vector<8x32xf32>
    %c0_44 = arith.constant 0 : index
    %c0_45 = arith.constant 0 : index
    %97 = vector.load %arg8[%c0_44, %c0_45] : memref<1x32xf32, #tpu.memory_space<vmem>>, vector<1x32xf32>
    %98 = vector.broadcast %97 : vector<1x32xf32> to vector<8x32xf32>
    %99 = arith.addf %96, %98 : vector<8x32xf32>
    %100 = math.tanh %99 : vector<8x32xf32>
    %c0_46 = arith.constant 0 : index
    %c0_47 = arith.constant 0 : index
    %101 = vector.load %arg17[%c0_46, %c0_47] : memref<8x32xf32, #tpu.memory_space<vmem>>, vector<8x32xf32>
    tpu.vector_store %arg17[%c0_46, %c0_47], %100 {strides = array<i32>} : memref<8x32xf32, #tpu.memory_space<vmem>>, vector<8x32xf32>,
    %102 = tpu.concatenate %100, %0 in 0 : vector<8x32xf32>, vector<8x32xf32> -> vector<16x32xf32>
    %103 = arith.truncf %102 : vector<16x32xf32> to vector<16x32xbf16>
    %c0_48 = arith.constant 0 : index
    %c0_49 = arith.constant 0 : index
    %104 = vector.load %arg9[%c0_48, %c0_49] : memref<32x64xbf16, #tpu.memory_space<vmem>>, vector<32x64xbf16>
    %cst_50 = arith.constant dense<0.000000e+00> : vector<16x64xf32>
    %105 = tpu.matmul %103, %104, %cst_50 {dimension_numbers = #tpu.dot_dimension_numbers<[1], [0], [0], [1], [0, 0, 1, 1], [], []>} : vector<16x32xbf16>, vector<32x64xbf16>, vector<16x64xf32> -> vector<16x64xf32>
    %c0_51 = arith.constant 0 : index
    %c0_52 = arith.constant 0 : index
    %106 = vector.load %arg10[%c0_51, %c0_52] : memref<1x64xf32, #tpu.memory_space<vmem>>, vector<1x64xf32>
    %107 = vector.broadcast %106 : vector<1x64xf32> to vector<16x64xf32>
    %108 = arith.addf %105, %107 : vector<16x64xf32>
    %109 = math.tanh %108 : vector<16x64xf32>
    %110 = arith.truncf %109 : vector<16x64xf32> to vector<16x64xbf16>
    %c0_53 = arith.constant 0 : index
    %c0_54 = arith.constant 0 : index
    %111 = vector.load %arg11[%c0_53, %c0_54] : memref<64x16xbf16, #tpu.memory_space<vmem>>, vector<64x16xbf16>
    %cst_55 = arith.constant dense<0.000000e+00> : vector<16x16xf32>
    %112 = tpu.matmul %110, %111, %cst_55 {dimension_numbers = #tpu.dot_dimension_numbers<[1], [0], [0], [1], [0, 0, 1, 1], [], []>} : vector<16x64xbf16>, vector<64x16xbf16>, vector<16x16xf32> -> vector<16x16xf32>
    %c0_56 = arith.constant 0 : index
    %c0_57 = arith.constant 0 : index
    %113 = vector.load %arg12[%c0_56, %c0_57] : memref<1x16xf32, #tpu.memory_space<vmem>>, vector<1x16xf32>
    %114 = vector.broadcast %113 : vector<1x16xf32> to vector<16x16xf32>
    %115 = arith.addf %112, %114 : vector<16x16xf32>
    %116 = math.tanh %115 : vector<16x16xf32>
    %117 = arith.truncf %116 : vector<16x16xf32> to vector<16x16xbf16>
    %c0_58 = arith.constant 0 : index
    %c0_59 = arith.constant 0 : index
    %118 = vector.load %arg13[%c0_58, %c0_59] : memref<16x1xbf16, #tpu.memory_space<vmem>>, vector<16x1xbf16>
    %cst_60 = arith.constant dense<0.000000e+00> : vector<16x1xf32>
    %119 = tpu.matmul %117, %118, %cst_60 {dimension_numbers = #tpu.dot_dimension_numbers<[1], [0], [0], [1], [0, 0, 1, 1], [], []>} : vector<16x16xbf16>, vector<16x1xbf16>, vector<16x1xf32> -> vector<16x1xf32>
    %c0_61 = arith.constant 0 : index
    %c0_62 = arith.constant 0 : index
    %120 = vector.load %arg14[%c0_61, %c0_62] : memref<1x1xf32, #tpu.memory_space<vmem>>, vector<1x1xf32>
    %121 = vector.broadcast %120 : vector<1x1xf32> to vector<16x1xf32>
    %122 = arith.addf %119, %121 : vector<16x1xf32>
    %123 = vector.extract_strided_slice %122 {offsets = [0, 0], sizes = [8, 1], strides = [1, 1]} : vector<16x1xf32> to vector<8x1xf32>
    %124 = vector.extract_strided_slice %122 {offsets = [8, 0], sizes = [8, 1], strides = [1, 1]} : vector<16x1xf32> to vector<8x1xf32>
    %c0_63 = arith.constant 0 : index
    %c0_64 = arith.constant 0 : index
    %125 = vector.load %arg15[%c0_63, %c0_64] : memref<512x4xbf16, #tpu.memory_space<vmem>>, vector<512x4xbf16>
    %c0_65 = arith.constant 0 : index
    %c0_66 = arith.constant 0 : index
    %126 = vector.load %arg16[%c0_65, %c0_66] : memref<1x4xf32, #tpu.memory_space<vmem>>, vector<1x4xf32>
    %127 = arith.mulf %84, %84 : vector<8x512xf32>
    %cst_67 = arith.constant dense<0.000000e+00> : vector<8xf32>
    %128 = vector.multi_reduction <add>, %127, %cst_67 [1] : vector<8x512xf32> to vector<8xf32>
    %129 = vector.shape_cast %128 : vector<8xf32> to vector<8x1xf32>
    %130 = arith.truncf %84 : vector<8x512xf32> to vector<8x512xbf16>
    %cst_68 = arith.constant dense<0.000000e+00> : vector<8x4xf32>
    %131 = tpu.matmul %130, %125, %cst_68 {dimension_numbers = #tpu.dot_dimension_numbers<[1], [0], [0], [1], [0, 0, 1, 1], [], []>} : vector<8x512xbf16>, vector<512x4xbf16>, vector<8x4xf32> -> vector<8x4xf32>
    %132 = vector.broadcast %129 : vector<8x1xf32> to vector<8x4xf32>
    %133 = vector.broadcast %126 : vector<1x4xf32> to vector<8x4xf32>
    %134 = arith.addf %132, %133 : vector<8x4xf32>
    %cst_69 = arith.constant 2.000000e+00 : f32
    %135 = vector.broadcast %cst_69 : f32 to vector<8x4xf32>
    %136 = arith.mulf %135, %131 : vector<8x4xf32>
    %137 = arith.subf %134, %136 : vector<8x4xf32>
    %cst_70 = arith.constant 0.000000e+00 : f32
    %138 = vector.broadcast %cst_70 : f32 to vector<8x4xf32>
    %139 = arith.maximumf %137, %138 : vector<8x4xf32>
    %cst_71 = arith.constant 1.000000e+00 : f32
    %140 = vector.broadcast %cst_71 : f32 to vector<8x4xf32>
    %141 = arith.addf %140, %139 : vector<8x4xf32>
    %cst_72 = arith.constant 1.000000e+00 : f32
    %142 = vector.broadcast %cst_72 : f32 to vector<8x4xf32>
    %143 = arith.divf %142, %141 : vector<8x4xf32>
    %cst_73 = arith.constant dense<0.000000e+00> : vector<8xf32>
    %144 = vector.multi_reduction <add>, %143, %cst_73 [1] : vector<8x4xf32> to vector<8xf32>
    %145 = vector.shape_cast %144 : vector<8xf32> to vector<8x1xf32>
    %146 = vector.broadcast %145 : vector<8x1xf32> to vector<8x4xf32>
    %147 = arith.divf %143, %146 : vector<8x4xf32>
    %148 = arith.mulf %92, %92 : vector<8x512xf32>
    %cst_74 = arith.constant dense<0.000000e+00> : vector<8xf32>
    %149 = vector.multi_reduction <add>, %148, %cst_74 [1] : vector<8x512xf32> to vector<8xf32>
    %150 = vector.shape_cast %149 : vector<8xf32> to vector<8x1xf32>
    %151 = arith.truncf %92 : vector<8x512xf32> to vector<8x512xbf16>
    %cst_75 = arith.constant dense<0.000000e+00> : vector<8x4xf32>
    %152 = tpu.matmul %151, %125, %cst_75 {dimension_numbers = #tpu.dot_dimension_numbers<[1], [0], [0], [1], [0, 0, 1, 1], [], []>} : vector<8x512xbf16>, vector<512x4xbf16>, vector<8x4xf32> -> vector<8x4xf32>
    %153 = vector.broadcast %150 : vector<8x1xf32> to vector<8x4xf32>
    %154 = vector.broadcast %126 : vector<1x4xf32> to vector<8x4xf32>
    %155 = arith.addf %153, %154 : vector<8x4xf32>
    %cst_76 = arith.constant 2.000000e+00 : f32
    %156 = vector.broadcast %cst_76 : f32 to vector<8x4xf32>
    %157 = arith.mulf %156, %152 : vector<8x4xf32>
    %158 = arith.subf %155, %157 : vector<8x4xf32>
    %cst_77 = arith.constant 0.000000e+00 : f32
    %159 = vector.broadcast %cst_77 : f32 to vector<8x4xf32>
    %160 = arith.maximumf %158, %159 : vector<8x4xf32>
    %cst_78 = arith.constant 1.000000e+00 : f32
    %161 = vector.broadcast %cst_78 : f32 to vector<8x4xf32>
    %162 = arith.addf %161, %160 : vector<8x4xf32>
    %cst_79 = arith.constant 1.000000e+00 : f32
    %163 = vector.broadcast %cst_79 : f32 to vector<8x4xf32>
    %164 = arith.divf %163, %162 : vector<8x4xf32>
    %cst_80 = arith.constant dense<0.000000e+00> : vector<8xf32>
    %165 = vector.multi_reduction <add>, %164, %cst_80 [1] : vector<8x4xf32> to vector<8xf32>
    %166 = vector.shape_cast %165 : vector<8xf32> to vector<8x1xf32>
    %167 = vector.broadcast %166 : vector<8x1xf32> to vector<8x4xf32>
    %168 = arith.divf %164, %167 : vector<8x4xf32>
    %cst_81 = arith.constant 0.000000e+00 : f32
    %169 = vector.broadcast %cst_81 : f32 to vector<8x128xf32>
    %c0_82 = arith.constant 0 : index
    %c0_83 = arith.constant 0 : index
    %170 = vector.load %arg21[%c0_82, %c0_83] : memref<8x128xf32, #tpu.memory_space<vmem>>, vector<8x128xf32>
    tpu.vector_store %arg21[%c0_82, %c0_83], %169 {strides = array<i32>} : memref<8x128xf32, #tpu.memory_space<vmem>>, vector<8x128xf32>,
    %c0_84 = arith.constant 0 : index
    %c0_85 = arith.constant 0 : index
    %171 = vector.load %arg21[%c0_84, %c0_85] : memref<8x128xf32, #tpu.memory_space<vmem>>, vector<8x4xf32>
    tpu.vector_store %arg21[%c0_84, %c0_85], %147 {strides = array<i32>} : memref<8x128xf32, #tpu.memory_space<vmem>>, vector<8x4xf32>,
    %c0_86 = arith.constant 0 : index
    %c4_87 = arith.constant 4 : index
    %172 = vector.load %arg21[%c0_86, %c4_87] : memref<8x128xf32, #tpu.memory_space<vmem>>, vector<8x4xf32>
    tpu.vector_store %arg21[%c0_86, %c4_87], %168 {strides = array<i32>} : memref<8x128xf32, #tpu.memory_space<vmem>>, vector<8x4xf32>,
    %c0_88 = arith.constant 0 : index
    %c8_89 = arith.constant 8 : index
    %173 = vector.load %arg21[%c0_88, %c8_89] : memref<8x128xf32, #tpu.memory_space<vmem>>, vector<8x1xf32>
    tpu.vector_store %arg21[%c0_88, %c8_89], %123 {strides = array<i32>} : memref<8x128xf32, #tpu.memory_space<vmem>>, vector<8x1xf32>,
    %c0_90 = arith.constant 0 : index
    %c9_91 = arith.constant 9 : index
    %174 = vector.load %arg21[%c0_90, %c9_91] : memref<8x128xf32, #tpu.memory_space<vmem>>, vector<8x1xf32>
    tpu.vector_store %arg21[%c0_90, %c9_91], %124 {strides = array<i32>} : memref<8x128xf32, #tpu.memory_space<vmem>>, vector<8x1xf32>,
    return
  }
  func.func @transform_0(%arg0: i32) -> (i32, i32) {
    %c0_i32 = arith.constant 0 : i32
    %c0_i32_0 = arith.constant 0 : i32
    return %arg0, %c0_i32 : i32, i32
  }
  func.func @transform_1(%arg0: i32) -> (i32, i32) {
    %c0_i32 = arith.constant 0 : i32
    %c0_i32_0 = arith.constant 0 : i32
    %c0_i32_1 = arith.constant 0 : i32
    return %c0_i32, %c0_i32_0 : i32, i32
  }
  func.func @transform_2(%arg0: i32) -> (i32, i32) {
    %c0_i32 = arith.constant 0 : i32
    %c0_i32_0 = arith.constant 0 : i32
    %c0_i32_1 = arith.constant 0 : i32
    return %c0_i32, %c0_i32_0 : i32, i32
  }
  func.func @transform_3(%arg0: i32) -> (i32, i32) {
    %c0_i32 = arith.constant 0 : i32
    %c0_i32_0 = arith.constant 0 : i32
    %c0_i32_1 = arith.constant 0 : i32
    return %c0_i32, %c0_i32_0 : i32, i32
  }
  func.func @transform_4(%arg0: i32) -> (i32, i32) {
    %c0_i32 = arith.constant 0 : i32
    %c0_i32_0 = arith.constant 0 : i32
    %c0_i32_1 = arith.constant 0 : i32
    return %c0_i32, %c0_i32_0 : i32, i32
  }
  func.func @transform_5(%arg0: i32) -> (i32, i32) {
    %c0_i32 = arith.constant 0 : i32
    %c0_i32_0 = arith.constant 0 : i32
    %c0_i32_1 = arith.constant 0 : i32
    return %c0_i32, %c0_i32_0 : i32, i32
  }
  func.func @transform_6(%arg0: i32) -> (i32, i32) {
    %c0_i32 = arith.constant 0 : i32
    %c0_i32_0 = arith.constant 0 : i32
    %c0_i32_1 = arith.constant 0 : i32
    return %c0_i32, %c0_i32_0 : i32, i32
  }
  func.func @transform_7(%arg0: i32) -> (i32, i32) {
    %c0_i32 = arith.constant 0 : i32
    %c0_i32_0 = arith.constant 0 : i32
    %c0_i32_1 = arith.constant 0 : i32
    return %c0_i32, %c0_i32_0 : i32, i32
  }
  func.func @transform_8(%arg0: i32) -> (i32, i32) {
    %c0_i32 = arith.constant 0 : i32
    %c0_i32_0 = arith.constant 0 : i32
    %c0_i32_1 = arith.constant 0 : i32
    return %c0_i32, %c0_i32_0 : i32, i32
  }
  func.func @transform_9(%arg0: i32) -> (i32, i32) {
    %c0_i32 = arith.constant 0 : i32
    %c0_i32_0 = arith.constant 0 : i32
    %c0_i32_1 = arith.constant 0 : i32
    return %c0_i32, %c0_i32_0 : i32, i32
  }
  func.func @transform_10(%arg0: i32) -> (i32, i32) {
    %c0_i32 = arith.constant 0 : i32
    %c0_i32_0 = arith.constant 0 : i32
    %c0_i32_1 = arith.constant 0 : i32
    return %c0_i32, %c0_i32_0 : i32, i32
  }
  func.func @transform_11(%arg0: i32) -> (i32, i32) {
    %c0_i32 = arith.constant 0 : i32
    %c0_i32_0 = arith.constant 0 : i32
    %c0_i32_1 = arith.constant 0 : i32
    return %c0_i32, %c0_i32_0 : i32, i32
  }
  func.func @transform_12(%arg0: i32) -> (i32, i32) {
    %c0_i32 = arith.constant 0 : i32
    %c0_i32_0 = arith.constant 0 : i32
    %c0_i32_1 = arith.constant 0 : i32
    return %c0_i32, %c0_i32_0 : i32, i32
  }
  func.func @transform_13(%arg0: i32) -> (i32, i32) {
    %c0_i32 = arith.constant 0 : i32
    %c0_i32_0 = arith.constant 0 : i32
    %c0_i32_1 = arith.constant 0 : i32
    return %c0_i32, %c0_i32_0 : i32, i32
  }
  func.func @transform_14(%arg0: i32) -> (i32, i32) {
    %c0_i32 = arith.constant 0 : i32
    %c0_i32_0 = arith.constant 0 : i32
    %c0_i32_1 = arith.constant 0 : i32
    return %c0_i32, %c0_i32_0 : i32, i32
  }
  func.func @transform_15(%arg0: i32) -> (i32, i32) {
    %c0_i32 = arith.constant 0 : i32
    %c0_i32_0 = arith.constant 0 : i32
    %c0_i32_1 = arith.constant 0 : i32
    return %c0_i32, %c0_i32_0 : i32, i32
  }
  func.func @transform_16(%arg0: i32) -> (i32, i32) {
    %c0_i32 = arith.constant 0 : i32
    %c0_i32_0 = arith.constant 0 : i32
    return %arg0, %c0_i32 : i32, i32
  }
  func.func @transform_17(%arg0: i32) -> (i32, i32) {
    %c0_i32 = arith.constant 0 : i32
    %c0_i32_0 = arith.constant 0 : i32
    return %arg0, %c0_i32 : i32, i32
  }
  func.func @transform_18(%arg0: i32) -> (i32, i32) {
    %c0_i32 = arith.constant 0 : i32
    %c0_i32_0 = arith.constant 0 : i32
    return %arg0, %c0_i32 : i32, i32
  }
  func.func @transform_19(%arg0: i32) -> (i32, i32) {
    %c0_i32 = arith.constant 0 : i32
    %c0_i32_0 = arith.constant 0 : i32
    return %arg0, %c0_i32 : i32, i32
  }
  func.func @transform_20(%arg0: i32) -> (i32, i32) {
    %c0_i32 = arith.constant 0 : i32
    %c0_i32_0 = arith.constant 0 : i32
    return %arg0, %c0_i32 : i32, i32
  }
}

</mosaic_0001>

<bundles_post_ra>
// kernel: tpu_custom_call.1
= control target key start
LH: loop header
LB: loop body
LE: loop exit
PB: predicated region body
PF: predicated region fallthrough
CT: control target
= control target key end

     0   :  { %s4447_s0 = inlined_call_operand.vmem [shape: f32[8,32], index: 0, kind: input, shape index: {}]   ;;  %s4448_s1 = inlined_call_operand.vmem [shape: bf16[32,512], index: 1, kind: input, shape index: {}]   ;;  %s4449_s2 = inlined_call_operand.vmem [shape: f32[1,512], index: 2, kind: input, shape index: {}]   ;;  %s4450_s3 = inlined_call_operand.vmem [shape: f32[12,512], index: 3, kind: input, shape index: {}]   ;;  %s4451_s4 = inlined_call_operand.hbm [shape: bf16[512,512], index: 4, kind: input, shape index: {}]   ;;  %s4452_s5 = inlined_call_operand.vmem [shape: f32[1,512], index: 5, kind: input, shape index: {}]   ;;  %s4453_s6 = inlined_call_operand.vmem [shape: bf16[512,32], index: 6, kind: input, shape index: {}]   ;;  %s4454_s7 = inlined_call_operand.vmem [shape: f32[1,32], index: 7, kind: input, shape index: {}]   ;;  %s4455_s8 = inlined_call_operand.vmem [shape: bf16[32,64], index: 8, kind: input, shape index: {}]   ;;  %s4456_s9 = inlined_call_operand.vmem [shape: f32[1,64], index: 9, kind: input, shape index: {}]   ;;  %s4457_s10 = inlined_call_operand.vmem [shape: bf16[64,16], index: 10, kind: input, shape index: {}]   ;;  %s4458_s11 = inlined_call_operand.vmem [shape: f32[1,16], index: 11, kind: input, shape index: {}]   ;;  %s4459_s12 = inlined_call_operand.vmem [shape: bf16[16,1], index: 12, kind: input, shape index: {}]   ;;  %s4460_s13 = inlined_call_operand.<no memory space> [shape: f32[1,1], index: 13, kind: input, shape index: {}]   ;;  %s4461_s14 = inlined_call_operand.vmem [shape: bf16[512,4], index: 14, kind: input, shape index: {}]   ;;  %s4462_s15 = inlined_call_operand.vmem [shape: f32[1,4], index: 15, kind: input, shape index: {}]   ;;  %s4463_s16 = inlined_call_operand.hbm [shape: f32[8,32], index: 16, kind: output, shape index: {0}]   ;;  %s4464_s17 = inlined_call_operand.hbm [shape: f32[8,512], index: 17, kind: output, shape index: {1}]   ;;  %s4465_s18 = inlined_call_operand.hbm [shape: f32[8,512], index: 18, kind: output, shape index: {2}]   ;;  %s4466_s19 = inlined_call_operand.hbm [shape: f32[8,512], index: 19, kind: output, shape index: {3}]   ;;  %s4467_s20 = inlined_call_operand.hbm [shape: f32[8,128], index: 20, kind: output, shape index: {4}]  }
   0x1   :  { %4472 = sst [smem:[#allocation17_spill]] %s4447_s0  ;;  %v26_v0 = vstv %s4460_s13 }
   0x2   :  { %4473 = sst [smem:[#allocation18_spill]] %s4448_s1  ;;  %27 = vst [vmem:[#allocation2] sm:$0x1] %v26_v0 }
   0x3   :  { %4474 = sst [smem:[#allocation19_spill]] %s4449_s2 }
   0x4   :  { %4475 = sst [smem:[#allocation20_spill]] %s4450_s3 }
   0x5   :  { %4476 = sst [smem:[#allocation21_spill]] %s4451_s4 }
   0x6   :  { %28 = vsyncpa [#allocation4], 0 }
   0x7   :  { %29 = vsyncpa [#allocation5], 0 }
   0x8   :  { %30 = vsyncpa [#allocation8], 0 }
   0x9   :  { %31 = vsyncpa [#allocation11], 0  ;;  %s3575_s23 = smov [#allocation3]   ;;  %s4477_s3 = sld [smem:[#allocation21_spill]] }
   0xa   :  { %s45_s24 = sshll.u32 %s3575_s23, 4  ;;  %s46_s24 = int_to_ptr.vmem [resolvable:$true] %s45_s24 }
   0xf   :  { %s3435_s26 = scalar_lea.hbm %s4477_s3, 16384 }
  0x10   :  { %p3436_p0 = scmp.ne.s32.totalorder %s4477_s3, %s3435_s26  ;;  %p3439_p1 = scmp.lt.u32.totalorder %s3435_s26, %s4477_s3 }
  0x12   :  { %p3441_p2 = pnand %p3439_p1, %p3436_p0 }
  0x14   :  { %3444 = shalt.err (!%p3441_p2)
}
  0x15   :  { %s3445_s13 = scalar_lea.vmem %s46_s24, 16384  ;;  %p3450_p4 = scmp.lt.s32.totalorder %s46_s24, %s46_s24 }
  0x16   :  { %p3446_p3 = scmp.ne.s32.totalorder %s46_s24, %s3445_s13  ;;  %p3451_p5 = scmp.lt.s32.totalorder %s3445_s13, %s3445_s13 }
  0x18   :  { %p3452_p6 = por %p3451_p5, %p3450_p4 }
  0x1a   :  { %p3453_p7 = pnand %p3452_p6, %p3446_p3 }
  0x1c   :  { %3456 = shalt.err (!%p3453_p7)
}
  0x1d   :  { %s3576_s30 = smov 256   ;;  %s3577_s0 = smov 16  }
  0x1e   :  { %51 = dma.hbm_to_vmem [thread:$0]  %s4477_s3, 16384, %s46_s24, [#allocation4], %s3576_s30, %s3576_s30, %s3577_s0  }
  0x1f   :  { %3567 = dma.done.wait [#allocation4], 16384  }
  0x20   :  { %3568 = vsyncadd [#allocation4], 4294950912  ;;  %v3578_v1 = vmov 0   ;;  %s4478_s2 = sld [smem:[#allocation18_spill]]  ;;  %s4479_s23 = sld [smem:[#allocation17_spill]]  ;;  %vm150_vm0 = vcmask 261120  }
  0x21   :  { %186 = vmatprep.mubr.bf16.mxu0 %v3578_v1  ;;  %227 = vmatprep.mubr.bf16.mxu1 %v3578_v1  ;;  %v3139_v12 = vld [vmem:[#allocation3 + $0x4] ss:$16 sps:$4 sm:$0xff]   ;;  %v3137_v13 = vld [vmem:[#allocation3] ss:$16 sps:$4 sm:$0xff]   ;;  %v3142_v14 = vld [vmem:[#allocation3 + $0xc] ss:$16 sps:$4 sm:$0xff]  }
  0x22   :  { %v3140_v15 = vld [vmem:[#allocation3 + $0x8] ss:$16 sps:$4 sm:$0xff]   ;;  %v3145_v16 = vld [vmem:[#allocation3 + $0x24] ss:$16 sps:$4 sm:$0xff]   ;;  %v3148_v17 = vld [vmem:[#allocation3 + $0x2c] ss:$16 sps:$4 sm:$0xff]  }
  0x23   :  { %v3143_v18 = vld [vmem:[#allocation3 + $0x20] ss:$16 sps:$4 sm:$0xff]   ;;  %v3151_v19 = vld [vmem:[#allocation3 + $0x44] ss:$16 sps:$4 sm:$0xff]   ;;  %v3146_v20 = vld [vmem:[#allocation3 + $0x28] ss:$16 sps:$4 sm:$0xff]  }
  0x24   :  { %v3154_v21 = vld [vmem:[#allocation3 + $0x4c] ss:$16 sps:$4 sm:$0xff]   ;;  %v3149_v22 = vld [vmem:[#allocation3 + $0x40] ss:$16 sps:$4 sm:$0xff]   ;;  %v3157_v23 = vld [vmem:[#allocation3 + $0x64] ss:$16 sps:$4 sm:$0xff]  }
  0x25   :  { %v3152_v24 = vld [vmem:[#allocation3 + $0x48] ss:$16 sps:$4 sm:$0xff]   ;;  %v3160_v25 = vld [vmem:[#allocation3 + $0x6c] ss:$16 sps:$4 sm:$0xff]   ;;  %v3155_v26 = vld [vmem:[#allocation3 + $0x60] ss:$16 sps:$4 sm:$0xff]  }
  0x26   :  { %v3125_v2 = vld [vmem:[%s4478_s2 + $0x4] ss:$16 sps:$4 sm:$0xff]   ;;  %v3127_v3 = vld [vmem:[%s4478_s2] ss:$16 sps:$4 sm:$0xff]   ;;  %v3128_v4 = vld [vmem:[%s4478_s2 + $0xc] ss:$16 sps:$4 sm:$0xff]  }
  0x27   :  { %154 = vmatprep.subr.bf16.mxu0 %v3125_v2  ;;  %v3130_v5 = vld [vmem:[%s4478_s2 + $0x24] ss:$16 sps:$4 sm:$0xff]   ;;  %v3132_v6 = vld [vmem:[%s4478_s2 + $0x8] ss:$16 sps:$4 sm:$0xff]   ;;  %v3133_v7 = vld [vmem:[%s4478_s2 + $0x20] ss:$16 sps:$4 sm:$0xff]   ;;  %195 = vmatprep.subr.bf16.mxu1 %v3128_v4 }
  0x28   :  { %155 = vmatpush1.bf16.msra.mxu0 %v3127_v3  ;;  %v3134_v8 = vld [vmem:[%s4478_s2 + $0x2c] ss:$16 sps:$4 sm:$0xff]   ;;  %196 = vmatpush1.bf16.msra.mxu1 %v3132_v6  ;;  %v78_v9 = vld [vmem:[%s4479_s23] sm:$0xff]  ;;  %v3136_v10 = vld [vmem:[%s4478_s2 + $0x28] ss:$16 sps:$4 sm:$0xff]   ;;  %s4480_s28 = sld [smem:[#allocation19_spill]] }
  0x29   :  { %156 = vmatprep.subr.bf16.mxu0 %v3130_v5  ;;  %197 = vmatprep.subr.bf16.mxu1 %v3134_v8  ;;  %v79_v11 = vpack.c.bf16 %v78_v9, %v78_v9  ;;  %v3163_v27 = vld [vmem:[#allocation3 + $0x84] ss:$16 sps:$4 sm:$0xff]   ;;  %v3158_v28 = vld [vmem:[#allocation3 + $0x68] ss:$16 sps:$4 sm:$0xff]   ;;  %v3161_v29 = vld [vmem:[#allocation3 + $0x80] ss:$16 sps:$4 sm:$0xff]  }
  0x2a   :  { %v3166_v30 = vld [vmem:[#allocation3 + $0x8c] ss:$16 sps:$4 sm:$0xff]   ;;  %v3169_v31 = vld [vmem:[#allocation3 + $0xa4] ss:$16 sps:$4 sm:$0xff]   ;;  %v3164_v32 = vld [vmem:[#allocation3 + $0x88] ss:$16 sps:$4 sm:$0xff]  }
  0x2b   :  { %v3172_v33 = vld [vmem:[#allocation3 + $0xac] ss:$16 sps:$4 sm:$0xff]   ;;  %v3167_v34 = vld [vmem:[#allocation3 + $0xa0] ss:$16 sps:$4 sm:$0xff]   ;;  %v3170_v35 = vld [vmem:[#allocation3 + $0xa8] ss:$16 sps:$4 sm:$0xff]  }
  0x2c   :  { %157 = vmatpush1.bf16.msra.mxu0 %v3133_v7  ;;  %198 = vmatpush1.bf16.msra.mxu1 %v3136_v10  ;;  %v3175_v36 = vld [vmem:[#allocation3 + $0xc4] ss:$16 sps:$4 sm:$0xff]   ;;  %v3178_v37 = vld [vmem:[#allocation3 + $0xcc] ss:$16 sps:$4 sm:$0xff]   ;;  %v3173_v38 = vld [vmem:[#allocation3 + $0xc0] ss:$16 sps:$4 sm:$0xff]  }
  0x2d   :  { %1405 = vmatprep.subr.bf16.mxu0 %v3139_v12  ;;  %1487 = vmatprep.subr.bf16.mxu1 %v3142_v14  ;;  %v3176_v39 = vld [vmem:[#allocation3 + $0xc8] ss:$16 sps:$4 sm:$0xff]   ;;  %v3181_v40 = vld [vmem:[#allocation3 + $0xe4] ss:$16 sps:$4 sm:$0xff]   ;;  %v3184_v41 = vld [vmem:[#allocation3 + $0xec] ss:$16 sps:$4 sm:$0xff]   ;;  %v90_v14 = vlaneseq }
  0x2e   :  { %v3179_v42 = vld [vmem:[#allocation3 + $0xe0] ss:$16 sps:$4 sm:$0xff]   ;;  %v3182_v43 = vld [vmem:[#allocation3 + $0xe8] ss:$16 sps:$4 sm:$0xff]   ;;  %v3187_v44 = vld [vmem:[#allocation3 + $0x104] ss:$16 sps:$4 sm:$0xff]  }
  0x2f   :  { %2707 = vmatmul.mubr.msk.bf16.vlgmr.msra.gmra.mrb[0].mxu0 %vm150_vm0, %v79_v11  ;;  %2708 = vmatmul.mubr.msk.bf16.vlgmr.msra.gmra.mrb[0].mxu1 %vm150_vm0, %v79_v11  ;;  %v3190_v45 = vld [vmem:[#allocation3 + $0x10c] ss:$16 sps:$4 sm:$0xff]   ;;  %v3185_v46 = vld [vmem:[#allocation3 + $0x100] ss:$16 sps:$4 sm:$0xff]   ;;  %v3188_v47 = vld [vmem:[#allocation3 + $0x108] ss:$16 sps:$4 sm:$0xff]  }
  0x30   :  { %1406 = vmatpush1.bf16.msra.mxu0 %v3137_v13  ;;  %1488 = vmatpush1.bf16.msra.mxu1 %v3140_v15  ;;  %v3193_v48 = vld [vmem:[#allocation3 + $0x124] ss:$16 sps:$4 sm:$0xff]   ;;  %v3196_v49 = vld [vmem:[#allocation3 + $0x12c] ss:$16 sps:$4 sm:$0xff]   ;;  %v3191_v50 = vld [vmem:[#allocation3 + $0x120] ss:$16 sps:$4 sm:$0xff]  }
  0x31   :  { %1407 = vmatprep.subr.bf16.mxu0 %v3145_v16  ;;  %1489 = vmatprep.subr.bf16.mxu1 %v3148_v17  ;;  %v3194_v51 = vld [vmem:[#allocation3 + $0x128] ss:$16 sps:$4 sm:$0xff]   ;;  %v3199_v52 = vld [vmem:[#allocation3 + $0x144] ss:$16 sps:$4 sm:$0xff]   ;;  %v3202_v53 = vld [vmem:[#allocation3 + $0x14c] ss:$16 sps:$4 sm:$0xff]  }
  0x32   :  { %v3197_v54 = vld [vmem:[#allocation3 + $0x140] ss:$16 sps:$4 sm:$0xff]   ;;  %v3200_v55 = vld [vmem:[#allocation3 + $0x148] ss:$16 sps:$4 sm:$0xff]   ;;  %v3205_v56 = vld [vmem:[#allocation3 + $0x164] ss:$16 sps:$4 sm:$0xff]  }
  0x33   :  { %v3208_v57 = vld [vmem:[#allocation3 + $0x16c] ss:$16 sps:$4 sm:$0xff]   ;;  %v3203_v58 = vld [vmem:[#allocation3 + $0x160] ss:$16 sps:$4 sm:$0xff]   ;;  %v3206_v59 = vld [vmem:[#allocation3 + $0x168] ss:$16 sps:$4 sm:$0xff]  }
  0x34   :  { %1408 = vmatpush1.bf16.msra.mxu0 %v3143_v18  ;;  %1490 = vmatpush1.bf16.msra.mxu1 %v3146_v20  ;;  %v3211_v60 = vld [vmem:[#allocation3 + $0x184] ss:$16 sps:$4 sm:$0xff]   ;;  %v3214_v61 = vld [vmem:[#allocation3 + $0x18c] ss:$16 sps:$4 sm:$0xff]   ;;  %v3209_v62 = vld [vmem:[#allocation3 + $0x180] ss:$16 sps:$4 sm:$0xff]  }
  0x35   :  { %1409 = vmatprep.subr.bf16.mxu0 %v3151_v19  ;;  %1491 = vmatprep.subr.bf16.mxu1 %v3154_v21  ;;  %v3212_v63 = vld [vmem:[#allocation3 + $0x188] ss:$16 sps:$4 sm:$0xff]   ;;  %v3215_v0 = vld [vmem:[#allocation3 + $0x1a0] ss:$16 sps:$4 sm:$0xff]   ;;  %v3217_v1 = vld [vmem:[#allocation3 + $0x1a4] ss:$16 sps:$4 sm:$0xff]  }
  0x36   :  { %v3218_v2 = vld [vmem:[#allocation3 + $0x1a8] ss:$16 sps:$4 sm:$0xff]   ;;  %v3220_v3 = vld [vmem:[#allocation3 + $0x1ac] ss:$16 sps:$4 sm:$0xff]   ;;  %v3223_v4 = vld [vmem:[#allocation3 + $0x1c4] ss:$16 sps:$4 sm:$0xff]  }
  0x37   :  { %v3226_v5 = vld [vmem:[#allocation3 + $0x1cc] ss:$16 sps:$4 sm:$0xff]   ;;  %v3221_v6 = vld [vmem:[#allocation3 + $0x1c0] ss:$16 sps:$4 sm:$0xff]   ;;  %v3224_v7 = vld [vmem:[#allocation3 + $0x1c8] ss:$16 sps:$4 sm:$0xff]  }
  0x38   :  { %1410 = vmatpush1.bf16.msra.mxu0 %v3149_v22  ;;  %1492 = vmatpush1.bf16.msra.mxu1 %v3152_v24  ;;  %v3229_v8 = vld [vmem:[#allocation3 + $0x1e4] ss:$16 sps:$4 sm:$0xff]   ;;  %v3232_v9 = vld [vmem:[#allocation3 + $0x1ec] ss:$16 sps:$4 sm:$0xff]   ;;  %v3227_v10 = vld [vmem:[#allocation3 + $0x1e0] ss:$16 sps:$4 sm:$0xff]  }
  0x39   :  { %1411 = vmatprep.subr.bf16.mxu0 %v3157_v23  ;;  %1493 = vmatprep.subr.bf16.mxu1 %v3160_v25  ;;  %v3230_v11 = vld [vmem:[#allocation3 + $0x1e8] ss:$16 sps:$4 sm:$0xff]   ;;  %v3235_v12 = vld [vmem:[#allocation3 + $0x204] ss:$16 sps:$4 sm:$0xff]   ;;  %v3238_v13 = vld [vmem:[#allocation3 + $0x20c] ss:$16 sps:$4 sm:$0xff]  }
  0x3a   :  { %v91_v15 = vshrl.u32 %v90_v14, 7  ;;  %v88_v17 = vld [vmem:[%s4480_s28] sm:$0xf]  ;;  %s4481_s4 = sld [smem:[#allocation20_spill]]  ;;  %vm3580_vm9 = vmmov 0   ;;  %vm2036_vm10 = vcmask 523264  }
  0x3b   :  { %vm2099_vm11 = vcmask 130048   ;;  %vm2503_vm12 = vcmask 31744   ;;  %s3582_s27 = smov 9   ;;  %s3583_s28 = smov [#allocation7]  }
  0x3c   :  { %1412 = vmatpush1.bf16.msra.mxu0 %v3155_v26  ;;  %1494 = vmatpush1.bf16.msra.mxu1 %v3158_v28  ;;  %v3738_v16 = vsub.s32 0, %v91_v15  ;;  %v3743_v18 = vsub.s32 1, %v91_v15  ;;  %v3745_v19 = vsub.s32 2, %v91_v15  ;;  %v3747_v20 = vsub.s32 3, %v91_v15  ;;  %s2646_s24 = sshll.u32 %s3583_s28, 4  ;;  %s2647_s24 = int_to_ptr.vmem [resolvable:$true] %s2646_s24 }
  0x3d   :  { %1413 = vmatprep.subr.bf16.mxu0 %v3163_v27  ;;  %1495 = vmatprep.subr.bf16.mxu1 %v3166_v30  ;;  %p3462_p9 = scmp.lt.s32.totalorder %s2647_s24, %s2647_s24 }
  0x3e   :  { %v93_v21 = vrot.slane %v88_v17, %v3738_v16  ;;  %v97_v22 = vrot.slane %v88_v17, %v3743_v18  ;;  %v101_v23 = vrot.slane %v88_v17, %v3745_v19  ;;  %v105_v25 = vrot.slane %v88_v17, %v3747_v20 }
  0x40   :  { %1414 = vmatpush1.bf16.msra.mxu0 %v3161_v29  ;;  %1496 = vmatpush1.bf16.msra.mxu1 %v3164_v32 }
  0x41   :  { %1415 = vmatprep.subr.bf16.mxu0 %v3169_v31  ;;  %1497 = vmatprep.subr.bf16.mxu1 %v3172_v33 }
  0x44   :  { %1416 = vmatpush1.bf16.msra.mxu0 %v3167_v34  ;;  %1498 = vmatpush1.bf16.msra.mxu1 %v3170_v35  ;;  %v3756_v35 = vld [vmem:[%s4481_s4 + $0x4] ss:$8 sm:$0xf] }
  0x45   :  { %1417 = vmatprep.subr.bf16.mxu0 %v3175_v36  ;;  %1499 = vmatprep.subr.bf16.mxu1 %v3178_v37  ;;  %v3761_v37 = vld [vmem:[%s4481_s4 + $0x20] ss:$8 sm:$0xf] }
  0x48   :  { %1418 = vmatpush1.bf16.msra.mxu0 %v3173_v38  ;;  %1500 = vmatpush1.bf16.msra.mxu1 %v3176_v39  ;;  %v3766_v39 = vld [vmem:[%s4481_s4] ss:$8 sm:$0xf] }
  0x49   :  { %1419 = vmatprep.subr.bf16.mxu0 %v3181_v40  ;;  %1501 = vmatprep.subr.bf16.mxu1 %v3184_v41  ;;  %v3771_v40 = vld [vmem:[%s4481_s4 + $0x1] ss:$8 sm:$0xf]  ;;  %v3776_v41 = vld [vmem:[%s4481_s4 + $0x5] ss:$8 sm:$0xf] }
  0x4c   :  { %1420 = vmatpush1.bf16.msra.mxu0 %v3179_v42  ;;  %1502 = vmatpush1.bf16.msra.mxu1 %v3182_v43  ;;  %v3781_v42 = vld [vmem:[%s4481_s4 + $0x21] ss:$8 sm:$0xf]  ;;  %v285_v43 = vrot.slane %v3756_v35, %v3743_v18 }
  0x4d   :  { %1421 = vmatprep.subr.bf16.mxu0 %v3187_v44  ;;  %1503 = vmatprep.subr.bf16.mxu1 %v3190_v45  ;;  %v306_v44 = vrot.slane %v3761_v37, %v3743_v18  ;;  %v335_v45 = vrot.slane %v3766_v39, %v3743_v18 }
  0x50   :  { %1422 = vmatpush1.bf16.msra.mxu0 %v3185_v46  ;;  %1504 = vmatpush1.bf16.msra.mxu1 %v3188_v47  ;;  %v412_v46 = vrot.slane %v3771_v40, %v3743_v18  ;;  %v3794_v47 = vld [vmem:[%s4481_s4 + $0x2] ss:$8 sm:$0xf] }
  0x51   :  { %1423 = vmatprep.subr.bf16.mxu0 %v3193_v48  ;;  %1505 = vmatprep.subr.bf16.mxu1 %v3196_v49  ;;  %v3799_v48 = vld [vmem:[%s4481_s4 + $0x6] ss:$8 sm:$0xf]  ;;  %v366_v49 = vrot.slane %v3776_v41, %v3743_v18 }
  0x54   :  { %1424 = vmatpush1.bf16.msra.mxu0 %v3191_v50  ;;  %1506 = vmatpush1.bf16.msra.mxu1 %v3194_v51  ;;  %v387_v50 = vrot.slane %v3781_v42, %v3743_v18  ;;  %v3808_v51 = vld [vmem:[%s4481_s4 + $0x22] ss:$8 sm:$0xf] }
  0x55   :  { %1425 = vmatprep.subr.bf16.mxu0 %v3199_v52  ;;  %1507 = vmatprep.subr.bf16.mxu1 %v3202_v53  ;;  %v3813_v52 = vld [vmem:[%s4481_s4 + $0x3] ss:$8 sm:$0xf]  ;;  %v281_v53 = vrot.slane %v3756_v35, %v3738_v16 }
  0x58   :  { %1426 = vmatpush1.bf16.msra.mxu0 %v3197_v54  ;;  %1508 = vmatpush1.bf16.msra.mxu1 %v3200_v55  ;;  %v302_v54 = vrot.slane %v3761_v37, %v3738_v16  ;;  %v3822_v55 = vld [vmem:[%s4481_s4 + $0x7] ss:$8 sm:$0xf] }
  0x59   :  { %1427 = vmatprep.subr.bf16.mxu0 %v3205_v56  ;;  %1509 = vmatprep.subr.bf16.mxu1 %v3208_v57  ;;  %v3827_v56 = vld [vmem:[%s4481_s4 + $0x23] ss:$8 sm:$0xf]  ;;  %v331_v57 = vrot.slane %v3766_v39, %v3738_v16 }
  0x5a   :  { %v537_v14 = vrot.slane %v3827_v56, %v3738_v16 }
  0x5c   :  { %1428 = vmatpush1.bf16.msra.mxu0 %v3203_v58  ;;  %1510 = vmatpush1.bf16.msra.mxu1 %v3206_v59  ;;  %v362_v58 = vrot.slane %v3776_v41, %v3738_v16  ;;  %v383_v59 = vrot.slane %v3781_v42, %v3738_v16 }
  0x5d   :  { %1429 = vmatprep.subr.bf16.mxu0 %v3211_v60  ;;  %1511 = vmatprep.subr.bf16.mxu1 %v3214_v61  ;;  %v408_v60 = vrot.slane %v3771_v40, %v3738_v16  ;;  %v443_v61 = vrot.slane %v3799_v48, %v3743_v18 }
  0x60   :  { %1430 = vmatpush1.bf16.msra.mxu0 %v3209_v62  ;;  %1512 = vmatpush1.bf16.msra.mxu1 %v3212_v63  ;;  %v489_v62 = vrot.slane %v3794_v47, %v3743_v18 }
  0x61   :  { %1431 = vmatprep.subr.bf16.mxu0 %v3217_v1  ;;  %1513 = vmatprep.subr.bf16.mxu1 %v3220_v3 }
  0x64   :  { %1432 = vmatpush1.bf16.msra.mxu0 %v3215_v0  ;;  %1514 = vmatpush1.bf16.msra.mxu1 %v3218_v2  ;;  %v464_v2 = vrot.slane %v3808_v51, %v3743_v18 }
  0x65   :  { %1433 = vmatprep.subr.bf16.mxu0 %v3223_v4  ;;  %1515 = vmatprep.subr.bf16.mxu1 %v3226_v5  ;;  %v439_v4 = vrot.slane %v3799_v48, %v3738_v16  ;;  %v460_v5 = vrot.slane %v3808_v51, %v3738_v16 }
  0x68   :  { %1434 = vmatpush1.bf16.msra.mxu0 %v3221_v6  ;;  %1516 = vmatpush1.bf16.msra.mxu1 %v3224_v7 }
  0x69   :  { %1435 = vmatprep.subr.bf16.mxu0 %v3229_v8  ;;  %1517 = vmatprep.subr.bf16.mxu1 %v3232_v9  ;;  %v520_v8 = vrot.slane %v3822_v55, %v3743_v18  ;;  %v541_v9 = vrot.slane %v3827_v56, %v3743_v18 }
  0x6c   :  { %1436 = vmatpush1.bf16.msra.mxu0 %v3227_v10  ;;  %1518 = vmatpush1.bf16.msra.mxu1 %v3230_v11  ;;  %v485_v10 = vrot.slane %v3794_v47, %v3738_v16 }
  0x6d   :  { %1446 = vmatprep.subr.bf16.mxu0 %v3235_v12  ;;  %1528 = vmatprep.subr.bf16.mxu1 %v3238_v13  ;;  %v516_v13 = vrot.slane %v3822_v55, %v3738_v16 }
 0x102   :  { %v188_v24 = vpop.f32.mrb[0].mxu0  ;;  %v229_v30 = vpop.f32.mrb[0].mxu1 }
 0x103   :  { %v189_v26 = vadd.f32 %v188_v24, %v93_v21  ;;  %v190_v27 = vpop.f32.mrb[1].mxu0  ;;  %v230_v32 = vadd.f32 %v229_v30, %v101_v23  ;;  %v231_v33 = vpop.f32.mrb[1].mxu1  ;;  %v293_v23 = vrot.slane %v3756_v35, %v3747_v20  ;;  %v314_v24 = vrot.slane %v3761_v37, %v3747_v20 }
 0x104   :  { %v191_v28 = vadd.f32 %v190_v27, %v97_v22  ;;  %v192_v29 = vpop.f32.mrb[2].mxu0  ;;  %v232_v34 = vadd.f32 %v231_v33, %v105_v25  ;;  %v233_v36 = vpop.f32.mrb[2].mxu1  ;;  %v343_v27 = vrot.slane %v3766_v39, %v3747_v20 }
 0x105   :  { %3400 = vtanh.f32 %v189_v26  ;;  %v193_v31 = vpop.f32.mrb[3].mxu0  ;;  %v234_v38 = vpop.f32.mrb[3].mxu1  ;;  %v447_v36 = vrot.slane %v3799_v48, %v3745_v19 }
 0x106   :  { %3402 = vtanh.f32 %v191_v28  ;;  %v374_v28 = vrot.slane %v3776_v41, %v3747_v20  ;;  %v395_v31 = vrot.slane %v3781_v42, %v3747_v20 }
 0x107   :  { %3404 = vtanh.f32 %v230_v32 }
 0x108   :  { %3406 = vtanh.f32 %v232_v34 }
 0x10f   :  { %v3401_v1 = vpop.eup %3400 }
 0x110   :  { %v3403_v6 = vpop.eup %3402  ;;  %v2709_v7 = vadd.f32 1.19985, %v3401_v1  ;;  %240 = vst [vmem:[#allocation10] sm:$0xff] %v3401_v1 }
 0x111   :  { %v3405_v11 = vpop.eup %3404  ;;  %v2710_v12 = vadd.f32 1.19985, %v3403_v6  ;;  %241 = vst [vmem:[#allocation10 + $0x8] sm:$0xff] %v3403_v6 }
 0x112   :  { %v3407_v17 = vpop.eup %3406  ;;  %v248_v21 = vmul.f32 1.2501562, %v2709_v7  ;;  %v2711_v22 = vadd.f32 1.19985, %v3405_v11  ;;  %242 = vst [vmem:[#allocation10 + $0x10] sm:$0xff] %v3405_v11  ;;  %v391_v7 = vrot.slane %v3781_v42, %v3745_v19  ;;  %v493_v11 = vrot.slane %v3794_v47, %v3745_v19 }
 0x113   :  { %v249_v25 = vmul.f32 1.2501562, %v2710_v12  ;;  %v2712_v26 = vadd.f32 1.19985, %v3407_v17  ;;  %243 = vst [vmem:[#allocation10 + $0x18] sm:$0xff] %v3407_v17 }
 0x114   :  { %v252_v29 = vfloor.f32 %v248_v21  ;;  %v250_v30 = vmul.f32 1.2501562, %v2711_v22  ;;  %v451_v22 = vrot.slane %v3799_v48, %v3747_v20 }
 0x115   :  { %v253_v33 = vfloor.f32 %v249_v25  ;;  %v251_v34 = vmul.f32 1.2501562, %v2712_v26  ;;  %v472_v26 = vrot.slane %v3808_v51, %v3747_v20 }
 0x116   :  { %v256_v1 = vmax.f32 %v252_v29, 0.0  ;;  %v254_v6 = vfloor.f32 %v250_v30 }
 0x117   :  { %v257_v12 = vmax.f32 %v253_v33, 0.0  ;;  %v255_v17 = vfloor.f32 %v251_v34  ;;  %v468_v33 = vrot.slane %v3808_v51, %v3745_v19 }
 0x118   :  { %v3889_v15 = vmin.f32 %v256_v1, 2.0  ;;  %v258_v3 = vmax.f32 %v254_v6, 0.0  ;;  %v528_v1 = vrot.slane %v3822_v55, %v3747_v20  ;;  %v549_v6 = vrot.slane %v3827_v56, %v3747_v20 }
 0x119   :  { %v261_v38 = vmin.f32 %v257_v12, 2.0  ;;  %v259_v63 = vmax.f32 %v255_v17, 0.0 }
 0x11a   :  { %v3899_v0 = vmin.f32 %v258_v3, 2.0  ;;  %vm273_vm1 = vcmp.lt.f32.partialorder %v3889_v15, 1.5  ;;  %v264_v12 = vsub.f32 %v248_v21, %v3889_v15  ;;  %vm323_vm4 = vcmp.lt.f32.partialorder %v3889_v15, 0.5 }
 0x11b   :  { %v265_v29 = vsub.f32 %v249_v25, %v261_v38  ;;  %v3906_v32 = vmin.f32 %v259_v63, 2.0  ;;  %vm274_vm2 = vcmp.lt.f32.partialorder %v261_v38, 1.5  ;;  %vm324_vm3 = vcmp.lt.f32.partialorder %v261_v38, 0.5 }
 0x11c   :  { %v320_v3 = vsel %vm274_vm2, %v285_v43, %v306_v44  ;;  %v401_v63 = vsel %vm274_vm2, %v366_v49, %v387_v50  ;;  %v478_v43 = vsel %vm274_vm2, %v443_v61, %v464_v2  ;;  %v524_v44 = vrot.slane %v3822_v55, %v3745_v19 }
 0x11d   :  { %v349_v21 = vsel %vm324_vm3, %v335_v45, %v320_v3  ;;  %v545_v49 = vrot.slane %v3827_v56, %v3745_v19  ;;  %v319_v45 = vsel %vm273_vm1, %v281_v53, %v302_v54  ;;  %v400_v61 = vsel %vm273_vm1, %v362_v58, %v383_v59 }
 0x11e   :  { %v584_v50 = vmul.f32 %v349_v21, %v265_v29  ;;  %v574_v2 = vrot.slane %v3813_v52, %v3747_v20  ;;  %v3958_v25 = vsub.f32 %v250_v30, %v3899_v0  ;;  %v267_v17 = vsub.f32 %v251_v34, %v3906_v32 }
 0x11f   :  { %v426_v53 = vsel %vm324_vm3, %v412_v46, %v401_v63  ;;  %v348_v42 = vsel %vm323_vm4, %v331_v57, %v319_v45  ;;  %v503_v54 = vsel %vm324_vm3, %v489_v62, %v478_v43  ;;  %v477_v46 = vsel %vm273_vm1, %v439_v4, %v460_v5 }
 0x120   :  { %v588_v58 = vadd.f32 %v584_v50, %v426_v53  ;;  %v583_v59 = vmul.f32 %v348_v42, %v264_v12  ;;  %v425_v57 = vsel %vm323_vm4, %v408_v60, %v400_v61  ;;  %vm276_vm5 = vcmp.lt.f32.partialorder %v3906_v32, 1.5 }
 0x121   :  { %vm326_vm6 = vcmp.lt.f32.partialorder %v3906_v32, 0.5  ;;  %vm275_vm7 = vcmp.lt.f32.partialorder %v3899_v0, 1.5  ;;  %v322_v48 = vsel %vm276_vm5, %v293_v23, %v314_v24  ;;  %v403_v60 = vsel %vm276_vm5, %v374_v28, %v395_v31  ;;  %v3247_v32 = vld [vmem:[#allocation3 + $0x244] ss:$16 sps:$4 sm:$0xff]  }
 0x122   :  { %v592_v51 = vmul.f32 %v588_v58, %v265_v29  ;;  %v587_v62 = vadd.f32 %v583_v59, %v425_v57  ;;  %v555_v4 = vsel %vm274_vm2, %v520_v8, %v541_v9  ;;  %v502_v5 = vsel %vm323_vm4, %v485_v10, %v477_v46  ;;  %v3236_v46 = vld [vmem:[#allocation3 + $0x208] ss:$16 sps:$4 sm:$0xff]   ;;  %v3244_v57 = vld [vmem:[#allocation3 + $0x22c] ss:$16 sps:$4 sm:$0xff]  }
 0x123   :  { %v554_v23 = vsel %vm273_vm1, %v516_v13, %v537_v14  ;;  %v351_v8 = vsel %vm326_vm6, %v343_v27, %v322_v48  ;;  %v4482_v10 = vrot.slane %v3771_v40, %v3747_v20  ;;  %v480_v55 = vsel %vm276_vm5, %v451_v22, %v472_v26 }
 0x124   :  { %v596_v9 = vadd.f32 %v592_v51, %v503_v54  ;;  %v591_v24 = vmul.f32 %v587_v62, %v264_v12  ;;  %v586_v28 = vmul.f32 %v351_v8, %v267_v17  ;;  %v4483_v13 = vrot.slane %v3761_v37, %v3745_v19 }
 0x125   :  { %v428_v56 = vsel %vm326_vm6, %v4482_v10, %v403_v60  ;;  %v4484_v14 = vrot.slane %v3756_v35, %v3745_v19  ;;  %vm325_vm8 = vcmp.lt.f32.partialorder %v3899_v0, 0.5  ;;  %v4485_v30 = vrot.slane %v3776_v41, %v3745_v19  ;;  %v3239_v60 = vld [vmem:[#allocation3 + $0x220] ss:$16 sps:$4 sm:$0xff]  }
 0x126   :  { %v600_v34 = vmul.f32 %v596_v9, %v265_v29  ;;  %v595_v22 = vadd.f32 %v591_v24, %v502_v5  ;;  %v4486_v26 = vrot.slane %v3766_v39, %v3745_v19  ;;  %v4487_v35 = vrot.slane %v3771_v40, %v3745_v19  ;;  %v3245_v0 = vld [vmem:[#allocation3 + $0x240] ss:$16 sps:$4 sm:$0xff]   ;;  %v3248_v9 = vld [vmem:[#allocation3 + $0x248] ss:$16 sps:$4 sm:$0xff]  }
 0x127   :  { %v321_v27 = vsel %vm275_vm7, %v4484_v14, %v4483_v13  ;;  %v402_v31 = vsel %vm275_vm7, %v4485_v30, %v391_v7  ;;  %v4488_v41 = vrot.slane %v3813_v52, %v3743_v18  ;;  %v590_v7 = vadd.f32 %v586_v28, %v428_v56  ;;  %v3256_v56 = vld [vmem:[#allocation3 + $0x26c] ss:$16 sps:$4 sm:$0xff]   ;;  %v3251_v28 = vld [vmem:[#allocation3 + $0x260] ss:$16 sps:$4 sm:$0xff]   ;;  %v3254_v13 = vld [vmem:[#allocation3 + $0x268] ss:$16 sps:$4 sm:$0xff]  }
 0x128   :  { %v350_v37 = vsel %vm325_vm8, %v4486_v26, %v321_v27  ;;  %v427_v3 = vsel %vm325_vm8, %v4487_v35, %v402_v31  ;;  %v479_v29 = vsel %vm275_vm7, %v447_v36, %v468_v33  ;;  %v599_v43 = vmul.f32 %v595_v22, %v264_v12  ;;  %v3259_v27 = vld [vmem:[#allocation3 + $0x284] ss:$16 sps:$4 sm:$0xff]   ;;  %v3262_v30 = vld [vmem:[#allocation3 + $0x28c] ss:$16 sps:$4 sm:$0xff]   ;;  %v3257_v31 = vld [vmem:[#allocation3 + $0x280] ss:$16 sps:$4 sm:$0xff]  }
 0x129   :  { %v580_v63 = vsel %vm324_vm3, %v4488_v41, %v555_v4  ;;  %v585_v39 = vmul.f32 %v350_v37, %v3958_v25  ;;  %v4489_v50 = vrot.slane %v3794_v47, %v3747_v20  ;;  %v570_v45 = vrot.slane %v3813_v52, %v3745_v19  ;;  %v3241_v47 = vld [vmem:[#allocation3 + $0x224] ss:$16 sps:$4 sm:$0xff]   ;;  %v3242_v4 = vld [vmem:[#allocation3 + $0x228] ss:$16 sps:$4 sm:$0xff]   ;;  %v3268_v26 = vld [vmem:[#allocation3 + $0x2ac] ss:$16 sps:$4 sm:$0xff]  }
 0x12a   :  { %v604_v21 = vadd.f32 %v600_v34, %v580_v63  ;;  %v4490_v38 = vrot.slane %v3813_v52, %v3738_v16  ;;  %v557_v36 = vsel %vm276_vm5, %v528_v1, %v549_v6  ;;  %v594_v33 = vmul.f32 %v590_v7, %v267_v17  ;;  %v3233_v52 = vld [vmem:[#allocation3 + $0x200] ss:$16 sps:$4 sm:$0xff]   ;;  %v3260_v34 = vld [vmem:[#allocation3 + $0x288] ss:$16 sps:$4 sm:$0xff]   ;;  %v3265_v22 = vld [vmem:[#allocation3 + $0x2a4] ss:$16 sps:$4 sm:$0xff]  }
 0x12b   :  { %v505_v40 = vsel %vm326_vm6, %v4489_v50, %v480_v55  ;;  %v589_v12 = vadd.f32 %v585_v39, %v427_v3  ;;  %v504_v54 = vsel %vm325_vm8, %v493_v11, %v479_v29  ;;  %v556_v59 = vsel %vm275_vm7, %v524_v44, %v545_v49  ;;  %v3263_v37 = vld [vmem:[#allocation3 + $0x2a0] ss:$16 sps:$4 sm:$0xff]   ;;  %v3266_v35 = vld [vmem:[#allocation3 + $0x2a8] ss:$16 sps:$4 sm:$0xff]   ;;  %v3271_v3 = vld [vmem:[#allocation3 + $0x2c4] ss:$16 sps:$4 sm:$0xff]  }
 0x12c   :  { %v579_v61 = vsel %vm323_vm4, %v4490_v38, %v554_v23  ;;  %v4077_v53 = vpack.c.bf16 %v604_v21, %v604_v21  ;;  %608 = vst [vmem:[#allocation7 + $0x8] sm:$0xff] %v604_v21  ;;  %v2210_v58 = vmul.f32 %v604_v21, %v604_v21  ;;  %v598_v15 = vadd.f32 %v594_v33, %v505_v40  ;;  %v3274_v41 = vld [vmem:[#allocation3 + $0x2cc] ss:$16 sps:$4 sm:$0xff]   ;;  %v3269_v63 = vld [vmem:[#allocation3 + $0x2c0] ss:$16 sps:$4 sm:$0xff]  }
 0x12d   :  { %v603_v42 = vadd.f32 %v599_v43, %v579_v61  ;;  %v593_v1 = vmul.f32 %v589_v12, %v3958_v25  ;;  %v582_v11 = vsel %vm326_vm6, %v574_v2, %v557_v36  ;;  %v581_v44 = vsel %vm325_vm8, %v570_v45, %v556_v59  ;;  %v3250_v2 = vld [vmem:[#allocation3 + $0x24c] ss:$16 sps:$4 sm:$0xff]   ;;  %v3272_v7 = vld [vmem:[#allocation3 + $0x2c8] ss:$16 sps:$4 sm:$0xff]   ;;  %v3277_v29 = vld [vmem:[#allocation3 + $0x2e4] ss:$16 sps:$4 sm:$0xff]  }
 0x12e   :  { %1437 = vmatprep.mubr.bf16.mxu0 %v4077_v53  ;;  %1519 = vmatprep.mubr.bf16.mxu1 %v4077_v53  ;;  %v602_v62 = vmul.f32 %v598_v15, %v267_v17  ;;  %v3280_v39 = vld [vmem:[#allocation3 + $0x2ec] ss:$16 sps:$4 sm:$0xff]   ;;  %v3275_v21 = vld [vmem:[#allocation3 + $0x2e0] ss:$16 sps:$4 sm:$0xff]   ;;  %v3278_v43 = vld [vmem:[#allocation3 + $0x2e8] ss:$16 sps:$4 sm:$0xff]  }
 0x12f   :  { %v4089_v6 = vpack.c.bf16 %v603_v42, %v603_v42  ;;  %607 = vst [vmem:[#allocation7] sm:$0xff] %v603_v42  ;;  %v2209_v51 = vmul.f32 %v603_v42, %v603_v42  ;;  %v597_v48 = vadd.f32 %v593_v1, %v504_v54  ;;  %v3283_v50 = vld [vmem:[#allocation3 + $0x304] ss:$16 sps:$4 sm:$0xff]   ;;  %v3286_v40 = vld [vmem:[#allocation3 + $0x30c] ss:$16 sps:$4 sm:$0xff]  }
 0x130   :  { %v606_v5 = vadd.f32 %v602_v62, %v582_v11  ;;  %v3281_v45 = vld [vmem:[#allocation3 + $0x300] ss:$16 sps:$4 sm:$0xff]   ;;  %v3284_v38 = vld [vmem:[#allocation3 + $0x308] ss:$16 sps:$4 sm:$0xff]   ;;  %v3289_v61 = vld [vmem:[#allocation3 + $0x324] ss:$16 sps:$4 sm:$0xff]  }
 0x131   :  { %1438 = vmatmul.mubr.bf16.vlgmr.msra.gmra.mrb[4].mxu0 %v4089_v6  ;;  %1520 = vmatmul.mubr.bf16.vlgmr.msra.gmra.mrb[4].mxu1 %v4089_v6  ;;  %v2213_v49 = vadd.f32 %v2210_v58, %v2209_v51  ;;  %v601_v23 = vmul.f32 %v597_v48, %v3958_v25  ;;  %v3253_v25 = vld [vmem:[#allocation3 + $0x264] ss:$16 sps:$4 sm:$0xff]   ;;  %v3292_v36 = vld [vmem:[#allocation3 + $0x32c] ss:$16 sps:$4 sm:$0xff]   ;;  %v3287_v33 = vld [vmem:[#allocation3 + $0x320] ss:$16 sps:$4 sm:$0xff]  }
 0x132   :  { %1447 = vmatpush1.bf16.msra.mxu0 %v3233_v52  ;;  %1529 = vmatpush1.bf16.msra.mxu1 %v3236_v46  ;;  %v4098_v17 = vpack.c.bf16 %v606_v5, %v606_v5  ;;  %610 = vst [vmem:[#allocation7 + $0x18] sm:$0xff] %v606_v5  ;;  %v2212_v10 = vmul.f32 %v606_v5, %v606_v5  ;;  %v3290_v12 = vld [vmem:[#allocation3 + $0x328] ss:$16 sps:$4 sm:$0xff]   ;;  %v3295_v42 = vld [vmem:[#allocation3 + $0x344] ss:$16 sps:$4 sm:$0xff]  }
 0x133   :  { %1448 = vmatprep.subr.bf16.mxu0 %v3241_v47  ;;  %1530 = vmatprep.subr.bf16.mxu1 %v3244_v57  ;;  %v4100_v8 = vadd.f32 %v601_v23, %v581_v44  ;;  %v3298_v54 = vld [vmem:[#allocation3 + $0x34c] ss:$16 sps:$4 sm:$0xff]   ;;  %v3293_v58 = vld [vmem:[#allocation3 + $0x340] ss:$16 sps:$4 sm:$0xff]   ;;  %v3296_v52 = vld [vmem:[#allocation3 + $0x348] ss:$16 sps:$4 sm:$0xff]  }
 0x134   :  { %1478 = vmatprep.mubr.bf16.mxu0 %v4098_v17  ;;  %1560 = vmatprep.mubr.bf16.mxu1 %v4098_v17  ;;  %v3301_v46 = vld [vmem:[#allocation3 + $0x364] ss:$16 sps:$4 sm:$0xff]   ;;  %v3304_v15 = vld [vmem:[#allocation3 + $0x36c] ss:$16 sps:$4 sm:$0xff]   ;;  %v3299_v59 = vld [vmem:[#allocation3 + $0x360] ss:$16 sps:$4 sm:$0xff]  }
 0x135   :  { %609 = vst [vmem:[#allocation7 + $0x10] sm:$0xff] %v4100_v8  ;;  %v2211_v24 = vmul.f32 %v4100_v8, %v4100_v8  ;;  %v3302_v1 = vld [vmem:[#allocation3 + $0x368] ss:$16 sps:$4 sm:$0xff]   ;;  %v3307_v47 = vld [vmem:[#allocation3 + $0x384] ss:$16 sps:$4 sm:$0xff]  }
 0x136   :  { %1449 = vmatpush1.bf16.msra.mxu0 %v3239_v60  ;;  %1531 = vmatpush1.bf16.msra.mxu1 %v3242_v4  ;;  %v3310_v57 = vld [vmem:[#allocation3 + $0x38c] ss:$16 sps:$4 sm:$0xff]   ;;  %v3305_v11 = vld [vmem:[#allocation3 + $0x380] ss:$16 sps:$4 sm:$0xff]   ;;  %v3308_v51 = vld [vmem:[#allocation3 + $0x388] ss:$16 sps:$4 sm:$0xff]  }
 0x137   :  { %1450 = vmatprep.subr.bf16.mxu0 %v3247_v32  ;;  %1532 = vmatprep.subr.bf16.mxu1 %v3250_v2  ;;  %v2214_v55 = vadd.f32 %v2213_v49, %v2211_v24  ;;  %v3313_v62 = vld [vmem:[#allocation3 + $0x3a4] ss:$16 sps:$4 sm:$0xff]   ;;  %v3316_v48 = vld [vmem:[#allocation3 + $0x3ac] ss:$16 sps:$4 sm:$0xff]   ;;  %v3311_v44 = vld [vmem:[#allocation3 + $0x3a0] ss:$16 sps:$4 sm:$0xff]  }
 0x138   :  { %v3314_v49 = vld [vmem:[#allocation3 + $0x3a8] ss:$16 sps:$4 sm:$0xff]   ;;  %v3319_v60 = vld [vmem:[#allocation3 + $0x3c4] ss:$16 sps:$4 sm:$0xff]   ;;  %v3322_v4 = vld [vmem:[#allocation3 + $0x3cc] ss:$16 sps:$4 sm:$0xff]  }
 0x139   :  { %v4107_v14 = vadd.f32 %v2214_v55, %v2212_v10  ;;  %v3317_v5 = vld [vmem:[#allocation3 + $0x3c0] ss:$16 sps:$4 sm:$0xff]   ;;  %v3320_v23 = vld [vmem:[#allocation3 + $0x3c8] ss:$16 sps:$4 sm:$0xff]   ;;  %v3325_v32 = vld [vmem:[#allocation3 + $0x3e4] ss:$16 sps:$4 sm:$0xff]   ;;  %v4123_v55 = vpack.c.bf16 %v4100_v8, %v4100_v8 }
 0x13a   :  { %1451 = vmatpush1.bf16.msra.mxu0 %v3245_v0  ;;  %1533 = vmatpush1.bf16.msra.mxu1 %v3248_v9  ;;  %v3328_v2 = vld [vmem:[#allocation3 + $0x3ec] ss:$16 sps:$4 sm:$0xff]   ;;  %v3323_v0 = vld [vmem:[#allocation3 + $0x3e0] ss:$16 sps:$4 sm:$0xff]   ;;  %v3326_v9 = vld [vmem:[#allocation3 + $0x3e8] ss:$16 sps:$4 sm:$0xff]  }
 0x13b   :  { %1452 = vmatprep.subr.bf16.mxu0 %v3253_v25  ;;  %1534 = vmatprep.subr.bf16.mxu1 %v3256_v56  ;;  %v3329_v24 = vld [vmem:[%s4453_s6 + $0x40] sm:$0xff]   ;;  %v3335_v8 = vld [vmem:[%s4453_s6 + $0x8] sm:$0xff]  }
 0x13c   :  { %v3330_v10 = vld [vmem:[%s4453_s6 + $0xc0] sm:$0xff]  }
 0x13d   :  { %v3331_v25 = vld [vmem:[%s4453_s6] sm:$0xff]  }
 0x13e   :  { %1453 = vmatpush1.bf16.msra.mxu0 %v3251_v28  ;;  %1535 = vmatpush1.bf16.msra.mxu1 %v3254_v13  ;;  %v3332_v56 = vld [vmem:[%s4453_s6 + $0x80] sm:$0xff]   ;;  %v3333_v28 = vld [vmem:[%s4453_s6 + $0x48] sm:$0xff]  }
 0x13f   :  { %1454 = vmatprep.subr.bf16.mxu0 %v3259_v27  ;;  %1536 = vmatprep.subr.bf16.mxu1 %v3262_v30  ;;  %v3334_v13 = vld [vmem:[%s4453_s6 + $0xc8] sm:$0xff]   ;;  %v3337_v30 = vld [vmem:[%s4453_s6 + $0x50] sm:$0xff]  }
 0x140   :  { %v3336_v27 = vld [vmem:[%s4453_s6 + $0x88] sm:$0xff]  }
 0x142   :  { %1455 = vmatpush1.bf16.msra.mxu0 %v3257_v31  ;;  %1537 = vmatpush1.bf16.msra.mxu1 %v3260_v34  ;;  %v3338_v31 = vld [vmem:[%s4453_s6 + $0xd0] sm:$0xff]  }
 0x143   :  { %1456 = vmatprep.subr.bf16.mxu0 %v3265_v22  ;;  %1538 = vmatprep.subr.bf16.mxu1 %v3268_v26  ;;  %v3339_v34 = vld [vmem:[%s4453_s6 + $0x10] sm:$0xff]   ;;  %v3341_v26 = vld [vmem:[%s4453_s6 + $0x58] sm:$0xff]  }
 0x144   :  { %v3340_v22 = vld [vmem:[%s4453_s6 + $0x90] sm:$0xff]  }
 0x146   :  { %1457 = vmatpush1.bf16.msra.mxu0 %v3263_v37  ;;  %1539 = vmatpush1.bf16.msra.mxu1 %v3266_v35  ;;  %v3342_v37 = vld [vmem:[%s4453_s6 + $0xd8] sm:$0xff]  }
 0x147   :  { %1458 = vmatprep.subr.bf16.mxu0 %v3271_v3  ;;  %1540 = vmatprep.subr.bf16.mxu1 %v3274_v41  ;;  %v3343_v35 = vld [vmem:[%s4453_s6 + $0x18] sm:$0xff]   ;;  %v3345_v41 = vld [vmem:[%s4453_s6 + $0x60] sm:$0xff]  }
 0x148   :  { %v3344_v3 = vld [vmem:[%s4453_s6 + $0x98] sm:$0xff]  }
 0x14a   :  { %1459 = vmatpush1.bf16.msra.mxu0 %v3269_v63  ;;  %1541 = vmatpush1.bf16.msra.mxu1 %v3272_v7  ;;  %v3346_v63 = vld [vmem:[%s4453_s6 + $0xe0] sm:$0xff]  }
 0x14b   :  { %1460 = vmatprep.subr.bf16.mxu0 %v3277_v29  ;;  %1542 = vmatprep.subr.bf16.mxu1 %v3280_v39  ;;  %v3347_v7 = vld [vmem:[%s4453_s6 + $0x20] sm:$0xff]   ;;  %v3349_v39 = vld [vmem:[%s4453_s6 + $0x68] sm:$0xff]  }
 0x14c   :  { %v3348_v29 = vld [vmem:[%s4453_s6 + $0xa0] sm:$0xff]  }
 0x14e   :  { %1461 = vmatpush1.bf16.msra.mxu0 %v3275_v21  ;;  %1543 = vmatpush1.bf16.msra.mxu1 %v3278_v43  ;;  %v3350_v21 = vld [vmem:[%s4453_s6 + $0xe8] sm:$0xff]  }
 0x14f   :  { %1462 = vmatprep.subr.bf16.mxu0 %v3283_v50  ;;  %1544 = vmatprep.subr.bf16.mxu1 %v3286_v40  ;;  %v3351_v43 = vld [vmem:[%s4453_s6 + $0x28] sm:$0xff]   ;;  %v3353_v40 = vld [vmem:[%s4453_s6 + $0x70] sm:$0xff]  }
 0x150   :  { %v3352_v50 = vld [vmem:[%s4453_s6 + $0xa8] sm:$0xff]  }
 0x152   :  { %1463 = vmatpush1.bf16.msra.mxu0 %v3281_v45  ;;  %1545 = vmatpush1.bf16.msra.mxu1 %v3284_v38  ;;  %v3354_v45 = vld [vmem:[%s4453_s6 + $0xf0] sm:$0xff]  }
 0x153   :  { %1464 = vmatprep.subr.bf16.mxu0 %v3289_v61  ;;  %1546 = vmatprep.subr.bf16.mxu1 %v3292_v36  ;;  %v3355_v38 = vld [vmem:[%s4453_s6 + $0x30] sm:$0xff]   ;;  %v3357_v36 = vld [vmem:[%s4453_s6 + $0x78] sm:$0xff]  }
 0x154   :  { %v3356_v61 = vld [vmem:[%s4453_s6 + $0xb0] sm:$0xff]  }
 0x156   :  { %1465 = vmatpush1.bf16.msra.mxu0 %v3287_v33  ;;  %1547 = vmatpush1.bf16.msra.mxu1 %v3290_v12  ;;  %v3358_v33 = vld [vmem:[%s4453_s6 + $0xf8] sm:$0xff]  }
 0x157   :  { %1466 = vmatprep.subr.bf16.mxu0 %v3295_v42  ;;  %1548 = vmatprep.subr.bf16.mxu1 %v3298_v54  ;;  %v3359_v12 = vld [vmem:[%s4453_s6 + $0x38] sm:$0xff]   ;;  %v743_v54 = vld [vmem:[%s4452_s5] sm:$0xf] }
 0x158   :  { %v3360_v42 = vld [vmem:[%s4453_s6 + $0xb8] sm:$0xff]   ;;  %s3457_s6 = scalar_lea.vmem %s2647_s24, 512 }
 0x159   :  { %p3458_p8 = scmp.ne.s32.totalorder %s2647_s24, %s3457_s6  ;;  %p3463_p10 = scmp.lt.s32.totalorder %s3457_s6, %s3457_s6 }
 0x15a   :  { %1467 = vmatpush1.bf16.msra.mxu0 %v3293_v58  ;;  %1549 = vmatpush1.bf16.msra.mxu1 %v3296_v52  ;;  %v748_v58 = vrot.slane %v743_v54, %v3738_v16  ;;  %v756_v52 = vrot.slane %v743_v54, %v3745_v19 }
 0x15b   :  { %1468 = vmatprep.subr.bf16.mxu0 %v3301_v46  ;;  %1550 = vmatprep.subr.bf16.mxu1 %v3304_v15  ;;  %v752_v46 = vrot.slane %v743_v54, %v3743_v18  ;;  %v760_v15 = vrot.slane %v743_v54, %v3747_v20  ;;  %p3464_p11 = por %p3463_p10, %p3462_p9 }
 0x15d   :  { %p3465_p12 = pnand %p3464_p11, %p3458_p8 }
 0x15e   :  { %1469 = vmatpush1.bf16.msra.mxu0 %v3299_v59  ;;  %1551 = vmatpush1.bf16.msra.mxu1 %v3302_v1 }
 0x15f   :  { %1470 = vmatprep.subr.bf16.mxu0 %v3307_v47  ;;  %1552 = vmatprep.subr.bf16.mxu1 %v3310_v57 }
 0x162   :  { %1471 = vmatpush1.bf16.msra.mxu0 %v3305_v11  ;;  %1553 = vmatpush1.bf16.msra.mxu1 %v3308_v51 }
 0x163   :  { %1472 = vmatprep.subr.bf16.mxu0 %v3313_v62  ;;  %1554 = vmatprep.subr.bf16.mxu1 %v3316_v48 }
 0x166   :  { %1473 = vmatpush1.bf16.msra.mxu0 %v3311_v44  ;;  %1555 = vmatpush1.bf16.msra.mxu1 %v3314_v49 }
 0x167   :  { %1474 = vmatprep.subr.bf16.mxu0 %v3319_v60  ;;  %1556 = vmatprep.subr.bf16.mxu1 %v3322_v4 }
 0x16a   :  { %1475 = vmatpush1.bf16.msra.mxu0 %v3317_v5  ;;  %1557 = vmatpush1.bf16.msra.mxu1 %v3320_v23 }
 0x16b   :  { %1476 = vmatprep.subr.bf16.mxu0 %v3325_v32  ;;  %1558 = vmatprep.subr.bf16.mxu1 %v3328_v2 }
 0x16e   :  { %1477 = vmatpush1.bf16.msra.mxu0 %v3323_v0  ;;  %1559 = vmatpush1.bf16.msra.mxu1 %v3326_v9 }
 0x16f   :  { %2931 = vmatprep.subr.bf16.mxu0 %v3329_v24  ;;  %2953 = vmatprep.subr.bf16.mxu1 %v3330_v10 }
 0x171   :  { %1479 = vmatmul.mubr.bf16.vlgmr.msra.gmra.mrb[4].mxu0 %v4123_v55  ;;  %1561 = vmatmul.mubr.bf16.vlgmr.msra.gmra.mrb[4].mxu1 %v4123_v55 }
 0x172   :  { %2932 = vmatpush3.bf16.msra.mxu0 %v3331_v25  ;;  %2954 = vmatpush3.bf16.msra.mxu1 %v3332_v56 }
 0x173   :  { %2933 = vmatprep.subr.bf16.mxu0 %v3333_v28  ;;  %2955 = vmatprep.subr.bf16.mxu1 %v3334_v13  ;;  %v3361_v13 = vld [vmem:[%s4455_s8] sm:$0xff]  }
 0x176   :  { %2934 = vmatpush3.bf16.msra.mxu0 %v3335_v8  ;;  %2956 = vmatpush3.bf16.msra.mxu1 %v3336_v27  ;;  %v3579_v8 = vmov 0.0   ;;  %v3362_v27 = vld [vmem:[%s4455_s8 + $0x8] sm:$0xff]  }
 0x177   :  { %2935 = vmatprep.subr.bf16.mxu0 %v3337_v30  ;;  %2957 = vmatprep.subr.bf16.mxu1 %v3338_v31  ;;  %2610 = vst [vmem:[#allocation12] sm:$0xff] %v3579_v8  ;;  %v2852_v31 = vld [vmem:[%s4454_s7] ss:$0 sm:$0xff] }
 0x17a   :  { %2936 = vmatpush3.bf16.msra.mxu0 %v3339_v34  ;;  %2958 = vmatpush3.bf16.msra.mxu1 %v3340_v22 }
 0x17b   :  { %2937 = vmatprep.subr.bf16.mxu0 %v3341_v26  ;;  %2959 = vmatprep.subr.bf16.mxu1 %v3342_v37 }
 0x17e   :  { %2938 = vmatpush3.bf16.msra.mxu0 %v3343_v35  ;;  %2960 = vmatpush3.bf16.msra.mxu1 %v3344_v3 }
 0x17f   :  { %2939 = vmatprep.subr.bf16.mxu0 %v3345_v41  ;;  %2961 = vmatprep.subr.bf16.mxu1 %v3346_v63 }
 0x182   :  { %2940 = vmatpush3.bf16.msra.mxu0 %v3347_v7  ;;  %2962 = vmatpush3.bf16.msra.mxu1 %v3348_v29 }
 0x183   :  { %2941 = vmatprep.subr.bf16.mxu0 %v3349_v39  ;;  %2963 = vmatprep.subr.bf16.mxu1 %v3350_v21  ;;  %v3434_v21 = vld [vmem:[%s4479_s23] sm:$0xff] }
 0x186   :  { %2942 = vmatpush3.bf16.msra.mxu0 %v3351_v43  ;;  %2964 = vmatpush3.bf16.msra.mxu1 %v3352_v50  ;;  %v3363_v50 = vld [vmem:[%s4457_s10] sm:$0xff]  }
 0x187   :  { %2943 = vmatprep.subr.bf16.mxu0 %v3353_v40  ;;  %2965 = vmatprep.subr.bf16.mxu1 %v3354_v45  ;;  %v3364_v40 = vld [vmem:[%s4457_s10 + $0x8] sm:$0xff]   ;;  %v3365_v45 = vld [vmem:[%s4457_s10 + $0x10] sm:$0xff]  }
 0x18a   :  { %2944 = vmatpush3.bf16.msra.mxu0 %v3355_v38  ;;  %2966 = vmatpush3.bf16.msra.mxu1 %v3356_v61  ;;  %v3366_v38 = vld [vmem:[%s4457_s10 + $0x18] sm:$0xff]   ;;  %v3367_v61 = vld [vmem:[%s4461_s14 + $0xc0] sm:$0xff]   ;;  %s3584_s10 = smov [#allocation10]  }
 0x18b   :  { %2945 = vmatprep.subr.bf16.mxu0 %v3357_v36  ;;  %2967 = vmatprep.subr.bf16.mxu1 %v3358_v33  ;;  %v2885_v36 = vld [vmem:[%s4456_s9] ss:$0 sm:$0xff]  ;;  %s2666_s5 = sshll.u32 %s3584_s10, 4  ;;  %s2667_s5 = int_to_ptr.vmem [resolvable:$true] %s2666_s5 }
 0x18e   :  { %2946 = vmatpush3.bf16.msra.mxu0 %v3359_v12  ;;  %2968 = vmatpush3.bf16.msra.mxu1 %v3360_v42 }
 0x18f   :  { %3073 = vmatprep.subr.bf16.mxu0 %v3579_v8  ;;  %3081 = vmatprep.subr.bf16.mxu1 %v3579_v8 }
 0x244   :  { %v1480_v59 = vpop.f32.mrb[4].mxu0  ;;  %v1562_v1 = vpop.f32.mrb[4].mxu1 }
 0x245   :  { %v3099_v47 = vadd.f32 %v1480_v59, %v748_v58  ;;  %v3101_v57 = vadd.f32 %v1562_v1, %v756_v52  ;;  %v1482_v11 = vpop.f32.mrb[5].mxu0  ;;  %v1564_v51 = vpop.f32.mrb[5].mxu1  ;;  %v3368_v59 = vld [vmem:[%s4461_s14 + $0x80] sm:$0xff]  }
 0x246   :  { %v3100_v62 = vadd.f32 %v1482_v11, %v752_v46  ;;  %v3102_v48 = vadd.f32 %v1564_v51, %v760_v15  ;;  %v1484_v44 = vpop.f32.mrb[6].mxu0  ;;  %v1566_v49 = vpop.f32.mrb[6].mxu1  ;;  %v3371_v11 = vld [vmem:[%s4461_s14 + $0xd0] sm:$0xff]  }
 0x247   :  { %3408 = vtanh.f32 %v3099_v47  ;;  %v1485_v60 = vpop.f32.mrb[7].mxu0  ;;  %v1567_v4 = vpop.f32.mrb[7].mxu1  ;;  %v3369_v47 = vld [vmem:[%s4461_s14 + $0xc8] sm:$0xff]   ;;  %v3372_v51 = vld [vmem:[%s4461_s14 + $0x90] sm:$0xff]   ;;  %v3376_v44 = vld [vmem:[%s4461_s14 + $0xa0] sm:$0xff]  }
 0x248   :  { %3410 = vtanh.f32 %v3101_v57  ;;  %v3370_v57 = vld [vmem:[%s4461_s14 + $0x88] sm:$0xff]   ;;  %v3379_v4 = vld [vmem:[%s4461_s14 + $0xf0] sm:$0xff]  }
 0x249   :  { %3412 = vtanh.f32 %v3100_v62  ;;  %v3373_v62 = vld [vmem:[%s4461_s14 + $0xd8] sm:$0xff]   ;;  %v3377_v49 = vld [vmem:[%s4461_s14 + $0xe8] sm:$0xff]  }
 0x24a   :  { %3414 = vtanh.f32 %v3102_v48  ;;  %v3375_v48 = vld [vmem:[%s4461_s14 + $0xe0] sm:$0xff]   ;;  %v3378_v60 = vld [vmem:[%s4461_s14 + $0xa8] sm:$0xff]  }
 0x251   :  { %v3409_v16 = vpop.eup %3408 }
 0x252   :  { %v3411_v18 = vpop.eup %3410  ;;  %1573 = vst [vmem:[#allocation9] sm:$0xff] %v3409_v16  ;;  %v2509_v19 = vmul.f32 %v3409_v16, %v3409_v16  ;;  %v4222_v0 = vpack.c.bf16 %v3409_v16, %v3409_v16  ;;  %v3380_v16 = vld [vmem:[%s4461_s14 + $0xb0] sm:$0xff]  }
 0x253   :  { %v3413_v20 = vpop.eup %3412  ;;  %1575 = vst [vmem:[#allocation9 + $0x10] sm:$0xff] %v3411_v18  ;;  %v4225_v9 = vpack.c.bf16 %v3411_v18, %v3411_v18  ;;  %v2511_v24 = vmul.f32 %v3411_v18, %v3411_v18  ;;  %v3381_v18 = vld [vmem:[%s4461_s14 + $0xf8] sm:$0xff]  }
 0x254   :  { %v3415_v5 = vpop.eup %3414  ;;  %1574 = vst [vmem:[#allocation9 + $0x8] sm:$0xff] %v3413_v20  ;;  %v4218_v23 = vpack.c.bf16 %v3413_v20, %v3413_v20  ;;  %v2510_v32 = vmul.f32 %v3413_v20, %v3413_v20  ;;  %v3384_v20 = vld [vmem:[%s4461_s14 + $0x40] sm:$0xff]  }
 0x255   :  { %1576 = vst [vmem:[#allocation9 + $0x18] sm:$0xff] %v3415_v5  ;;  %v4220_v2 = vpack.c.bf16 %v3415_v5, %v3415_v5  ;;  %v2512_v25 = vmul.f32 %v3415_v5, %v3415_v5  ;;  %v2889_v5 = vld [vmem:[%s4458_s11] ss:$0 sm:$0xff] }
 0x256   :  { %1876 = vmatprep.mubr.bf16.mxu0 %v4218_v23  ;;  %v2513_v10 = vadd.f32 %v2510_v32, %v2509_v19  ;;  %v3382_v19 = vld [vmem:[%s4461_s14 + $0xb8] sm:$0xff]  }
 0x257   :  { %1916 = vmatprep.mubr.bf16.mxu1 %v4220_v2  ;;  %1877 = vmatmul.mubr.bf16.vlgmr.msra.gmra.mrb[8].mxu0 %v4222_v0 }
 0x258   :  { %1917 = vmatmul.mubr.bf16.vlgmr.msra.gmra.mrb[8].mxu1 %v4225_v9  ;;  %v2514_v56 = vadd.f32 %v2513_v10, %v2511_v24  ;;  %3074 = vmatpush3.bf16.msra.mxu0 %v3361_v13  ;;  %v3385_v13 = vld [vmem:[%s4461_s14] sm:$0xff]  }
 0x259   :  { %3075 = vmatprep.subr.bf16.mxu0 %v3579_v8  ;;  %3077 = vmatprep.mubr.msk.bf16.mxu0 %vm3580_vm9, %v3579_v8 }
 0x25a   :  { %v2515_v28 = vadd.f32 %v2514_v56, %v2512_v25  ;;  %3089 = vmatprep.mubr.msk.bf16.mxu1 %vm3580_vm9, %v3579_v8  ;;  %3082 = vmatpush3.bf16.msra.mxu1 %v3363_v50  ;;  %v3399_v50 = vld [vmem:[%s4461_s14 + $0x38] sm:$0xff]  }
 0x25b   :  { %3083 = vmatprep.subr.bf16.mxu1 %v3579_v8 }
 0x25c   :  { %2516 = vadd.xlane.f32.xlu0 %v2515_v28  ;;  %3076 = vmatpush3.bf16.msra.mxu0 %v3362_v27  ;;  %v3386_v27 = vld [vmem:[%s4461_s14 + $0x48] sm:$0xff]  }
 0x25d   :  { %3093 = vmatprep.subr.bf16.mxu0 %v3579_v8 }
 0x25e   :  { %3084 = vmatpush3.bf16.msra.mxu1 %v3364_v40 }
 0x25f   :  { %3085 = vmatprep.subr.bf16.mxu1 %v3579_v8 }
 0x260   :  { %2216 = vadd.xlane.f32.xlu0 %v4107_v14 }
 0x262   :  { %3086 = vmatpush3.bf16.msra.mxu1 %v3365_v45 }
 0x263   :  { %3087 = vmatprep.subr.bf16.mxu1 %v3579_v8 }
 0x266   :  { %3088 = vmatpush3.bf16.msra.mxu1 %v3366_v38 }
 0x267   :  { %3007 = vmatprep.subr.bf16.mxu1 %v3367_v61 }
 0x32a   :  { %v2947_v14 = vpop.f32.mrb[8].mxu0 }
 0x32b   :  { %v2969_v30 = vpop.f32.mrb[8].mxu1  ;;  %v2948_v34 = vpop.f32.mrb[9].mxu0 }
 0x32c   :  { %v2949_v22 = vadd.f32 %v2948_v34, %v2947_v14  ;;  %v2970_v26 = vpop.f32.mrb[9].mxu1  ;;  %v2950_v37 = vpop.f32.mrb[10].mxu0  ;;  %v3387_v14 = vld [vmem:[%s4461_s14 + $0x8] sm:$0xff]   ;;  %v3390_v34 = vld [vmem:[%s4461_s14 + $0x58] sm:$0xff]  }
 0x32d   :  { %v2971_v35 = vadd.f32 %v2970_v26, %v2969_v30  ;;  %v2972_v3 = vpop.f32.mrb[10].mxu1  ;;  %v2951_v41 = vpop.f32.mrb[11].mxu0  ;;  %v3388_v30 = vld [vmem:[%s4461_s14 + $0x50] sm:$0xff]   ;;  %v3393_v26 = vld [vmem:[%s4461_s14 + $0x20] sm:$0xff]  }
 0x32e   :  { %v1879_v63 = vadd.f32 %v2949_v22, %v2852_v31  ;;  %v2973_v7 = vpop.f32.mrb[11].mxu1  ;;  %v3389_v31 = vld [vmem:[%s4461_s14 + $0x10] sm:$0xff]   ;;  %v3392_v22 = vld [vmem:[%s4461_s14 + $0x60] sm:$0xff]  }
 0x330   :  { %v1919_v29 = vadd.f32 %v2971_v35, %v1879_v63  ;;  %v3394_v35 = vld [vmem:[%s4461_s14 + $0x68] sm:$0xff]  }
 0x332   :  { %3416 = vtanh.f32 %v1919_v29  ;;  %v3395_v29 = vld [vmem:[%s4461_s14 + $0x28] sm:$0xff]  }
 0x33c   :  { %v3417_v39 = vpop.eup %3416 }
 0x33d   :  { %1925 = vst.msk [vmem:[#allocation6] sm:$0xff] %vm150_vm0, %v3417_v39  ;;  %v1926_v43 = vpack.c.bf16 %v3434_v21, %v3417_v39  ;;  %v3396_v39 = vld [vmem:[%s4461_s14 + $0x70] sm:$0xff]  }
 0x33e   :  { %v3397_v21 = vld [vmem:[%s4461_s14 + $0x30] sm:$0xff]  }
 0x33f   :  { %3078 = vmatmul.mubr.msk.bf16.vlgmr.msra.gmra.mrb[12].mxu0 %vm150_vm0, %v1926_v43  ;;  %v3398_v43 = vld [vmem:[%s4461_s14 + $0x78] sm:$0xff]  }
 0x340   :  { %3095 = vmatprep.mubr.msk.bf16.mxu0 %vm3580_vm9, %v3579_v8 }
 0x412   :  { %v1987_v33 = vpop.f32.mrb[12].mxu0 }
 0x413   :  { %v1988_v12 = vadd.f32 %v2885_v36, %v1987_v33  ;;  %v3079_v42 = vpop.f32.mrb[13].mxu0 }
 0x414   :  { %v1990_v54 = vpop.f32.mrb[14].mxu0 }
 0x415   :  { %v1991_v58 = vadd.f32 %v2885_v36, %v1990_v54  ;;  %v3080_v52 = vpop.f32.mrb[15].mxu0  ;;  %3418 = vtanh.f32 %v1988_v12 }
 0x417   :  { %3420 = vtanh.f32 %v1991_v58 }
 0x41f   :  { %v3419_v46 = vpop.eup %3418 }
 0x421   :  { %v3421_v15 = vpop.eup %3420 }
 0x422   :  { %v1996_v1 = vpack.c.bf16 %v3421_v15, %v3419_v46 }
 0x424   :  { %3090 = vmatmul.mubr.msk.bf16.vlgmr.msra.gmra.mrb[12].mxu1 %vm2036_vm10, %v1996_v1 }
 0x425   :  { %3008 = vmatpush3.bf16.msra.mxu1 %v3368_v59  ;;  %2482 = vmatprep.mubr.bf16.mxu1 %v4098_v17  ;;  %v3374_v17 = vld [vmem:[%s4461_s14 + $0x98] sm:$0xff]  }
 0x426   :  { %3009 = vmatprep.subr.bf16.mxu1 %v3369_v47 }
 0x429   :  { %3010 = vmatpush3.bf16.msra.mxu1 %v3370_v57 }
 0x42a   :  { %3011 = vmatprep.subr.bf16.mxu1 %v3371_v11 }
 0x42d   :  { %3012 = vmatpush3.bf16.msra.mxu1 %v3372_v51 }
 0x42e   :  { %3013 = vmatprep.subr.bf16.mxu1 %v3373_v62 }
 0x431   :  { %3014 = vmatpush3.bf16.msra.mxu1 %v3374_v17 }
 0x432   :  { %3015 = vmatprep.subr.bf16.mxu1 %v3375_v48 }
 0x435   :  { %3016 = vmatpush3.bf16.msra.mxu1 %v3376_v44 }
 0x436   :  { %3017 = vmatprep.subr.bf16.mxu1 %v3377_v49 }
 0x439   :  { %3018 = vmatpush3.bf16.msra.mxu1 %v3378_v60 }
 0x43a   :  { %3019 = vmatprep.subr.bf16.mxu1 %v3379_v4 }
 0x43d   :  { %3020 = vmatpush3.bf16.msra.mxu1 %v3380_v16 }
 0x43e   :  { %3021 = vmatprep.subr.bf16.mxu1 %v3381_v18 }
 0x441   :  { %3022 = vmatpush3.bf16.msra.mxu1 %v3382_v19 }
 0x442   :  { %3051 = vmatprep.subr.bf16.mxu1 %v3367_v61 }
 0x444   :  { %2483 = vmatmul.mubr.bf16.vlgmr.msra.gmra.mrb[16].mxu1 %v4123_v55  ;;  %v3383_v55 = vld [vmem:[%s4459_s12] sm:$0xff]  }
 0x445   :  { %3052 = vmatpush3.bf16.msra.mxu1 %v3368_v59  ;;  %2590 = vmatprep.mubr.bf16.mxu1 %v4220_v2  ;;  %v2517_v59 = vpop.xlane.xlu0 %2516 }
 0x446   :  { %3053 = vmatprep.subr.bf16.mxu1 %v3369_v47  ;;  %3094 = vmatpush3.bf16.msra.mxu0 %v3383_v55 }
 0x447   :  { %2985 = vmatprep.subr.bf16.mxu0 %v3384_v20 }
 0x449   :  { %3054 = vmatpush3.bf16.msra.mxu1 %v3370_v57  ;;  %v2217_v1 = vpop.xlane.xlu0 %2216 }
 0x44a   :  { %3055 = vmatprep.subr.bf16.mxu1 %v3371_v11  ;;  %v2930_v11 = vld [vmem:[%s4462_s15] ss:$0 sm:$0xff]  ;;  %s3581_s15 = smov 8  }
 0x44d   :  { %3056 = vmatpush3.bf16.msra.mxu1 %v3372_v51 }
 0x44e   :  { %3057 = vmatprep.subr.bf16.mxu1 %v3373_v62 }
 0x451   :  { %3058 = vmatpush3.bf16.msra.mxu1 %v3374_v17 }
 0x452   :  { %3059 = vmatprep.subr.bf16.mxu1 %v3375_v48 }
 0x455   :  { %3060 = vmatpush3.bf16.msra.mxu1 %v3376_v44 }
 0x456   :  { %3061 = vmatprep.subr.bf16.mxu1 %v3377_v49 }
 0x459   :  { %3062 = vmatpush3.bf16.msra.mxu1 %v3378_v60  ;;  %v2598_v60 = vadd.f32 %v2930_v11, %v2517_v59 }
 0x45a   :  { %3063 = vmatprep.subr.bf16.mxu1 %v3379_v4 }
 0x45d   :  { %3064 = vmatpush3.bf16.msra.mxu1 %v3380_v16 }
 0x45e   :  { %3065 = vmatprep.subr.bf16.mxu1 %v3381_v18 }
 0x461   :  { %3066 = vmatpush3.bf16.msra.mxu1 %v3382_v19 }
 0x464   :  { %2591 = vmatmul.mubr.bf16.vlgmr.msra.gmra.mrb[20].mxu1 %v4225_v9 }
 0x4f7   :  { %v2074_v32 = vpop.f32.mrb[12].mxu1 }
 0x4f8   :  { %v2075_v2 = vadd.f32 %v2889_v5, %v2074_v32  ;;  %v3091_v24 = vpop.f32.mrb[13].mxu1 }
 0x4f9   :  { %v2077_v10 = vpop.f32.mrb[14].mxu1 }
 0x4fa   :  { %v2078_v25 = vadd.f32 %v2889_v5, %v2077_v10  ;;  %v3092_v9 = vpop.f32.mrb[15].mxu1  ;;  %3422 = vtanh.f32 %v2075_v2  ;;  %v2895_v10 = vld [vmem:[#allocation2] ss:$0 sm:$0xff] }
 0x4fc   :  { %3424 = vtanh.f32 %v2078_v25 }
 0x504   :  { %v3423_v56 = vpop.eup %3422 }
 0x506   :  { %v3425_v28 = vpop.eup %3424 }
 0x507   :  { %v2083_v8 = vpack.c.bf16 %v3425_v28, %v3423_v56 }
 0x509   :  { %3096 = vmatmul.mubr.msk.bf16.vlgmr.msra.gmra.mrb[16].mxu0 %vm2099_vm11, %v2083_v8 }
 0x50a   :  { %2986 = vmatpush3.bf16.msra.mxu0 %v3385_v13  ;;  %2442 = vmatprep.mubr.bf16.mxu0 %v4077_v53  ;;  %v3391_v53 = vld [vmem:[%s4461_s14 + $0x18] sm:$0xff]  }
 0x50b   :  { %2987 = vmatprep.subr.bf16.mxu0 %v3386_v27 }
 0x50e   :  { %2988 = vmatpush3.bf16.msra.mxu0 %v3387_v14 }
 0x50f   :  { %2989 = vmatprep.subr.bf16.mxu0 %v3388_v30 }
 0x512   :  { %2990 = vmatpush3.bf16.msra.mxu0 %v3389_v31 }
 0x513   :  { %2991 = vmatprep.subr.bf16.mxu0 %v3390_v34 }
 0x516   :  { %2992 = vmatpush3.bf16.msra.mxu0 %v3391_v53 }
 0x517   :  { %v3023_v37 = vpop.f32.mrb[16].mxu1  ;;  %2993 = vmatprep.subr.bf16.mxu0 %v3392_v22 }
 0x518   :  { %v3024_v3 = vpop.f32.mrb[17].mxu1 }
 0x519   :  { %v3025_v41 = vadd.f32 %v3024_v3, %v3023_v37  ;;  %v3026_v63 = vpop.f32.mrb[18].mxu1 }
 0x51a   :  { %2994 = vmatpush3.bf16.msra.mxu0 %v3393_v26  ;;  %v3027_v7 = vpop.f32.mrb[19].mxu1 }
 0x51b   :  { %2995 = vmatprep.subr.bf16.mxu0 %v3394_v35 }
 0x51e   :  { %2996 = vmatpush3.bf16.msra.mxu0 %v3395_v29 }
 0x51f   :  { %2997 = vmatprep.subr.bf16.mxu0 %v3396_v39 }
 0x522   :  { %2998 = vmatpush3.bf16.msra.mxu0 %v3397_v21 }
 0x523   :  { %2999 = vmatprep.subr.bf16.mxu0 %v3398_v43 }
 0x526   :  { %3000 = vmatpush3.bf16.msra.mxu0 %v3399_v50 }
 0x527   :  { %3029 = vmatprep.subr.bf16.mxu0 %v3384_v20 }
 0x529   :  { %2443 = vmatmul.mubr.bf16.vlgmr.msra.gmra.mrb[20].mxu0 %v4089_v6 }
 0x52a   :  { %3030 = vmatpush3.bf16.msra.mxu0 %v3385_v13  ;;  %2550 = vmatprep.mubr.bf16.mxu0 %v4218_v23 }
 0x52b   :  { %3031 = vmatprep.subr.bf16.mxu0 %v3386_v27 }
 0x52e   :  { %3032 = vmatpush3.bf16.msra.mxu0 %v3387_v14 }
 0x52f   :  { %3033 = vmatprep.subr.bf16.mxu0 %v3388_v30 }
 0x532   :  { %3034 = vmatpush3.bf16.msra.mxu0 %v3389_v31 }
 0x533   :  { %3035 = vmatprep.subr.bf16.mxu0 %v3390_v34 }
 0x536   :  { %3036 = vmatpush3.bf16.msra.mxu0 %v3391_v53 }
 0x537   :  { %v3067_v40 = vpop.f32.mrb[20].mxu1  ;;  %3037 = vmatprep.subr.bf16.mxu0 %v3392_v22 }
 0x538   :  { %v3068_v45 = vpop.f32.mrb[21].mxu1 }
 0x539   :  { %v3069_v38 = vadd.f32 %v3068_v45, %v3067_v40  ;;  %v3070_v61 = vpop.f32.mrb[22].mxu1 }
 0x53a   :  { %3038 = vmatpush3.bf16.msra.mxu0 %v3393_v26  ;;  %v3071_v36 = vpop.f32.mrb[23].mxu1 }
 0x53b   :  { %3039 = vmatprep.subr.bf16.mxu0 %v3394_v35 }
 0x53e   :  { %3040 = vmatpush3.bf16.msra.mxu0 %v3395_v29 }
 0x53f   :  { %3041 = vmatprep.subr.bf16.mxu0 %v3396_v39 }
 0x542   :  { %3042 = vmatpush3.bf16.msra.mxu0 %v3397_v21 }
 0x543   :  { %3043 = vmatprep.subr.bf16.mxu0 %v3398_v43 }
 0x546   :  { %3044 = vmatpush3.bf16.msra.mxu0 %v3399_v50 }
 0x549   :  { %2551 = vmatmul.mubr.bf16.vlgmr.msra.gmra.mrb[24].mxu0 %v4222_v0  ;;  %v2496_v0 = vadd.f32 %v2930_v11, %v2217_v1 }
 0x5dc   :  { %v2137_v6 = vpop.f32.mrb[16].mxu0 }
 0x5dd   :  { %v3097_v23 = vpop.f32.mrb[17].mxu0  ;;  %v2138_v25 = vadd.f32 %v2895_v10, %v2137_v6 }
 0x5de   :  { %v2140_v33 = vpop.f32.mrb[18].mxu0 }
 0x5df   :  { %v3098_v12 = vpop.f32.mrb[19].mxu0  ;;  %v2141_v9 = vadd.f32 %v2895_v10, %v2140_v33 }
 0x5fc   :  { %v3001_v42 = vpop.f32.mrb[20].mxu0 }
 0x5fd   :  { %v3002_v54 = vpop.f32.mrb[21].mxu0 }
 0x5fe   :  { %v3003_v58 = vadd.f32 %v3002_v54, %v3001_v42  ;;  %v3004_v52 = vpop.f32.mrb[22].mxu0 }
 0x5ff   :  { %v3005_v46 = vpop.f32.mrb[23].mxu0 }
 0x600   :  { %v2485_v15 = vadd.f32 %v3025_v41, %v3003_v58 }
 0x602   :  { %v2497_v47 = vmul.f32 2.0, %v2485_v15 }
 0x604   :  { %v2498_v44 = vsub.f32 %v2496_v0, %v2497_v47 }
 0x606   :  { %v2499_v16 = vmax.f32 %v2498_v44, 0.0 }
 0x608   :  { %v2500_v55 = vadd.f32 1.0, %v2499_v16 }
 0x61c   :  { %v3045_v57 = vpop.f32.mrb[24].mxu0 }
 0x61d   :  { %v3046_v51 = vpop.f32.mrb[25].mxu0 }
 0x61e   :  { %v3047_v62 = vadd.f32 %v3046_v51, %v3045_v57  ;;  %v3048_v17 = vpop.f32.mrb[26].mxu0 }
 0x61f   :  { %v3049_v48 = vpop.f32.mrb[27].mxu0 }
 0x620   :  { %v2593_v49 = vadd.f32 %v3069_v38, %v3047_v62 }
 0x622   :  { %v2599_v4 = vmul.f32 2.0, %v2593_v49 }
 0x624   :  { %v2600_v18 = vsub.f32 %v2598_v60, %v2599_v4 }
 0x626   :  { %v2601_v19 = vmax.f32 %v2600_v18, 0.0 }
 0x628   :  { %v2602_v20 = vadd.f32 1.0, %v2601_v19 }
 0x62a   :  { %3426 = vrcp.f32 %v2602_v20 }
 0x62b   :  { %3428 = vrcp.f32 %v2500_v55 }
 0x634   :  { %v4376_v5 = vpop.eup %3426 }
 0x635   :  { %v2605_v32 = vsel %vm2503_vm12, %v4376_v5, 0.0  ;;  %v4380_v2 = vpop.eup %3428 }
 0x636   :  { %2606 = vadd.xlane.f32.xlu1 %v2605_v32  ;;  %v2504_v24 = vsel %vm2503_vm12, %v4380_v2, 0.0 }
 0x63a   :  { %2505 = vadd.xlane.f32.xlu1 %v2504_v24 }
 0x64b   :  { %2619 = vrot.lane.b32.xlu1 %v2138_v25, %s3581_s15 }
 0x64f   :  { %2625 = vrot.lane.b32.xlu1 %v2141_v9, %s3582_s27 }
 0x6c3   :  { %v2607_v56 = vpop.xlane.xlu1 %2606 }
 0x6c4   :  { %3430 = vrcp.f32 %v2607_v56 }
 0x6c7   :  { %v2506_v28 = vpop.xlane.xlu1 %2505 }
 0x6c8   :  { %3468 = shalt.err (!%p3465_p12)
}
 0x6c9   :  { %s3469_s29 = scalar_lea.hbm %s4464_s17, 512 }
 0x6ca   :  { %p3470_p13 = scmp.ne.s32.totalorder %s4464_s17, %s3469_s29  ;;  %p3473_p0 = scmp.lt.u32.totalorder %s3469_s29, %s4464_s17 }
 0x6cc   :  { %p3475_p1 = pnand %p3473_p0, %p3470_p13 }
 0x6ce   :  { %3478 = shalt.err (!%p3475_p1)
}
 0x6cf   :  { %2649 = dma.vmem_to_hbm [thread:$0]  %s2647_s24, 512, %s4464_s17, [#allocation8]   ;;  %3432 = vrcp.f32 %v2506_v28 }
 0x6d0   :  { %s3479_s1 = scalar_lea.vmem %s2667_s5, 512  ;;  %p3484_p3 = scmp.lt.s32.totalorder %s2667_s5, %s2667_s5 }
 0x6d1   :  { %p3480_p2 = scmp.ne.s32.totalorder %s2667_s5, %s3479_s1  ;;  %p3485_p4 = scmp.lt.s32.totalorder %s3479_s1, %s3479_s1 }
 0x6d3   :  { %p3486_p5 = por %p3485_p4, %p3484_p3 }
 0x6d5   :  { %p3487_p6 = pnand %p3486_p5, %p3480_p2 }
 0x6d7   :  { %3490 = shalt.err (!%p3487_p6)
}
 0x6d8   :  { %s3491_s25 = scalar_lea.hbm %s4466_s19, 512 }
 0x6d9   :  { %p3492_p7 = scmp.ne.s32.totalorder %s4466_s19, %s3491_s25  ;;  %p3495_p8 = scmp.lt.u32.totalorder %s3491_s25, %s4466_s19 }
 0x6db   :  { %p3497_p9 = pnand %p3495_p8, %p3492_p7 }
 0x6dd   :  { %3500 = shalt.err (!%p3497_p9)
}
 0x6de   :  { %2669 = dma.vmem_to_hbm [thread:$0]  %s2667_s5, 512, %s4466_s19, [#allocation11]  }
 0x6df   :  { %s3585_s2 = smov [#allocation6]   ;;  %s3586_s27 = smov [#allocation9]  }
 0x6e0   :  { %s2636_s15 = sshll.u32 %s3585_s2, 4  ;;  %s2656_s28 = sshll.u32 %s3586_s27, 4  ;;  %s2637_s15 = int_to_ptr.vmem [resolvable:$true] %s2636_s15  ;;  %s2657_s28 = int_to_ptr.vmem [resolvable:$true] %s2656_s28 }
 0x6e1   :  { %s3501_s24 = scalar_lea.vmem %s2637_s15, 128  ;;  %p3506_p11 = scmp.lt.s32.totalorder %s2637_s15, %s2637_s15 }
 0x6e2   :  { %p3502_p10 = scmp.ne.s32.totalorder %s2637_s15, %s3501_s24  ;;  %p3507_p12 = scmp.lt.s32.totalorder %s3501_s24, %s3501_s24 }
 0x6e4   :  { %p3508_p13 = por %p3507_p12, %p3506_p11 }
 0x6e6   :  { %p3509_p0 = pnand %p3508_p13, %p3502_p10 }
 0x6e8   :  { %3512 = shalt.err (!%p3509_p0)
}
 0x6e9   :  { %s3513_s3 = scalar_lea.hbm %s4463_s16, 128 }
 0x6ea   :  { %p3514_p1 = scmp.ne.s32.totalorder %s4463_s16, %s3513_s3  ;;  %p3517_p2 = scmp.lt.u32.totalorder %s3513_s3, %s4463_s16 }
 0x6ec   :  { %p3519_p3 = pnand %p3517_p2, %p3514_p1 }
 0x6ee   :  { %3522 = shalt.err (!%p3519_p3)
}
 0x6ef   :  { %2639 = dma.vmem_to_hbm [thread:$0]  %s2637_s15, 128, %s4463_s16, [#allocation5]  }
 0x6f0   :  { %s3523_s8 = scalar_lea.vmem %s2657_s28, 512  ;;  %p3528_p5 = scmp.lt.s32.totalorder %s2657_s28, %s2657_s28 }
 0x6f1   :  { %p3524_p4 = scmp.ne.s32.totalorder %s2657_s28, %s3523_s8  ;;  %p3529_p6 = scmp.lt.s32.totalorder %s3523_s8, %s3523_s8 }
 0x6f3   :  { %p3530_p7 = por %p3529_p6, %p3528_p5 }
 0x6f5   :  { %p3531_p8 = pnand %p3530_p7, %p3524_p4 }
 0x6f7   :  { %3534 = shalt.err (!%p3531_p8)
}
 0x6f8   :  { %s3535_s21 = scalar_lea.hbm %s4465_s18, 512 }
 0x6f9   :  { %p3536_p9 = scmp.ne.s32.totalorder %s4465_s18, %s3535_s21  ;;  %p3539_p10 = scmp.lt.u32.totalorder %s3535_s21, %s4465_s18 }
 0x6fb   :  { %p3541_p11 = pnand %p3539_p10, %p3536_p9 }
 0x6fd   :  { %3544 = shalt.err (!%p3541_p11)
}
 0x6fe   :  { %2659 = dma.vmem_to_hbm [thread:$0]  %s2657_s28, 512, %s4465_s18, [#allocation8]   ;;  %v3431_v13 = vpop.eup %3430  ;;  %v2620_v30 = vpop.permute.xlu1 %2619  ;;  %vm2616_vm13 = vcmask 64544   ;;  %vm2622_vm14 = vcmask 72768   ;;  %vm2628_vm15 = vcmask 80968  }
 0x6ff   :  { %v2609_v8 = vmul.f32 %v3431_v13, %v4376_v5  ;;  %s3587_s23 = smov 4   ;;  %v3433_v27 = vpop.eup %3432  ;;  %s3588_s11 = smov [#allocation12]  }
 0x700   :  { %v2508_v14 = vmul.f32 %v3433_v27, %v4380_v2  ;;  %s2676_s26 = sshll.u32 %s3588_s11, 4  ;;  %s2677_s26 = int_to_ptr.vmem [resolvable:$true] %s2676_s26 }
 0x701   :  { %2613 = vrot.lane.b32.xlu0 %v2609_v8, %s3587_s23  ;;  %s3545_s18 = scalar_lea.vmem %s2677_s26, 128  ;;  %p3550_p13 = scmp.lt.s32.totalorder %s2677_s26, %s2677_s26 }
 0x702   :  { %2611 = vst.msk [vmem:[#allocation12] sm:$0xff] %vm2503_vm12, %v2508_v14  ;;  %v2626_v34 = vpop.permute.xlu1 %2625  ;;  %p3546_p12 = scmp.ne.s32.totalorder %s2677_s26, %s3545_s18  ;;  %p3551_p0 = scmp.lt.s32.totalorder %s3545_s18, %s3545_s18 }
 0x704   :  { %p3552_p1 = por %p3551_p0, %p3550_p13 }
 0x706   :  { %p3553_p2 = pnand %p3552_p1, %p3546_p12 }
 0x773   :  { %v2614_v31 = vpop.permute.xlu0 %2613 }
 0x774   :  { %2617 = vst.msk [vmem:[#allocation12] sm:$0xff] %vm2616_vm13, %v2614_v31 }
 0x775   :  { %2623 = vst.msk [vmem:[#allocation12] sm:$0xff] %vm2622_vm14, %v2620_v30 }
 0x776   :  { %2629 = vst.msk [vmem:[#allocation12] sm:$0xff] %vm2628_vm15, %v2626_v34 }
 0x777   :  { %3556 = shalt.err (!%p3553_p2)
}
 0x778   :  { %s3557_s2 = scalar_lea.hbm %s4467_s20, 128 }
 0x779   :  { %p3558_p3 = scmp.ne.s32.totalorder %s4467_s20, %s3557_s2  ;;  %p3561_p4 = scmp.lt.u32.totalorder %s3557_s2, %s4467_s20 }
 0x77b   :  { %p3563_p5 = pnand %p3561_p4, %p3558_p3 }
 0x77d   :  { %3566 = shalt.err (!%p3563_p5)
}
 0x77e   :  { %2679 = dma.vmem_to_hbm [thread:$0]  %s2677_s26, 128, %s4467_s20, [#allocation11]  }
 0x77f   :  { %3569 = dma.done.wait [#allocation5], 128  }
 0x780   :  { %3570 = vsyncadd [#allocation5], 4294967168 }
 0x781   :  { %3571 = dma.done.wait [#allocation8], 1024  }
 0x782   :  { %3572 = vsyncadd [#allocation8], 4294966272 }
 0x783   :  { %3573 = dma.done.wait [#allocation11], 640  }
 0x784   :  { %3574 = vsyncadd [#allocation11], 4294966656 }
 0x785   :  { %2695 = vsyncpa [#allocation4], 1 }
 0x786   :  { %2696 = vsyncpa [#allocation5], 1 }
 0x787   :  { %2697 = vsyncpa [#allocation8], 1 }
 0x788   :  { %2698 = vsyncpa [#allocation11], 1 }

</bundles_post_ra>
